<compile_context>
chip_gen: v5e
topology: v5e:2x2
jax: 0.10.0
libtpu: 0.0.40
codegen_flags: <defaults>
</compile_context>

<pallas_src>
import math
import jax
import jax.numpy as jnp
from jax.experimental import pallas as pl
from jax.experimental.pallas import tpu as pltpu


def _make_no_y_kernel(scales, D):
    """scales: tuple of Python floats (compile-time constants)."""
    F = len(scales)
    FD = F * D

    def kernel(x_ref, out_ref):
        x = x_ref[...]                                          # (D, L) lane-dense
        # freq-major, coord-minor along sublanes: row f*D + d == x[d]*scales[f]
        xe = jnp.concatenate([x * s for s in scales], axis=0)   # (F*D, L)
        odt = out_ref.dtype
        out_ref[:FD, :] = jnp.sin(xe).astype(odt)               # sin(x_enc[:FD])
        out_ref[FD:2 * FD, :] = jnp.cos(xe).astype(odt)         # sin(x_enc + pi/2)
        out_ref[2 * FD:, :] = x.astype(odt)                     # identity tail

    return kernel


def _make_with_y_kernel(scales, D):
    F = len(scales)
    FD = F * D

    def kernel(x_ref, y_ref, xret_ref, yret_ref):
        x = x_ref[...]                                          # (D, L)
        y = y_ref[...]                                          # (D, L)
        xe = jnp.concatenate([x * s for s in scales], axis=0)           # (FD, L)
        ye = jnp.concatenate([y * (s * s) for s in scales], axis=0)     # (FD, L)

        e = jnp.exp(-0.5 * ye)        # EUP slab #1, shared by both y_enc halves
        s_ = jnp.sin(xe)              # EUP slab #2
        c_ = jnp.cos(xe)              # EUP slab #3  (== sin(xe + pi/2))

        e2 = e * e
        e4 = e2 * e2                  # exp(-2 * y_enc)   (VPU only)
        xr0 = e * s_                  # x_ret rows [0:FD]
        xr1 = e * c_                  # x_ret rows [FD:2FD]
        # cos(2*xe) = 1 - 2 sin^2 ; cos(2*(xe + pi/2)) = 1 - 2 cos^2   (VPU only)
        yr0 = jnp.maximum(0.5 * (1.0 - e4 * (1.0 - 2.0 * s_ * s_)) - xr0 * xr0, 0.0)
        yr1 = jnp.maximum(0.5 * (1.0 - e4 * (1.0 - 2.0 * c_ * c_)) - xr1 * xr1, 0.0)

        xdt = xret_ref.dtype
        ydt = yret_ref.dtype
        xret_ref[:FD, :] = xr0.astype(xdt)
        xret_ref[FD:, :] = xr1.astype(xdt)
        yret_ref[:FD, :] = yr0.astype(ydt)
        yret_ref[FD:, :] = yr1.astype(ydt)

    return kernel


class PositionalEncodingMIP:
    """JAX/Pallas port of nerfmatch PositionalEncodingMIP (forward only)."""

    def __init__(self, num_freqs, min_deg=0, tile_lanes=8192, out_dtype=jnp.float32):
        assert tile_lanes >= 128 and tile_lanes % 128 == 0, \
            "tile_lanes must be a positive multiple of 128"
        self.min_deg = min_deg
        self.max_deg = num_freqs
        self.num_freqs = num_freqs
        self.tile_lanes = tile_lanes
        self.out_dtype = out_dtype
        # deterministic "parameter": 2**i for i in [min_deg, max_deg)
        self.scales_py = tuple(float(2.0 ** i) for i in range(min_deg, self.max_deg))
        self.scales = jnp.asarray(self.scales_py, dtype=jnp.float32)

    def get_embedding_dim(self, in_dim):
        return 2 * in_dim * self.num_freqs + in_dim

    def _tiling(self, N):
        """Pick a lane-tile (multiple of 128). Guarantee >=2 grid steps when N
        spans >=2 lane groups so both v7x TensorCores get work."""
        lane_groups = pl.cdiv(N, 128)
        tile = self.tile_lanes
        if lane_groups * 128 <= tile:
            if lane_groups >= 2:
                tile = 128 * pl.cdiv(lane_groups, 2)   # split into (at least) 2 steps
            else:
                tile = 128
        grid_n = pl.cdiv(N, tile)
        return tile, grid_n, grid_n * tile

    def __call__(self, x, y=None):
        lead = x.shape[:-1]
        D = x.shape[-1]
        F = self.num_freqs
        FD = F * D
        N = int(math.prod(lead)) if lead else 1

        # coordinate-major (lane-dense): (D, N); transposing D*N floats is cheap.
        xt = x.reshape(N, D).astype(jnp.float32).T
        tile, grid_n, N_pad = self._tiling(N)
        pad = N_pad - N
        if pad:
            xt = jnp.pad(xt, ((0, 0), (0, pad)))

        in_spec = pl.BlockSpec((D, tile), lambda i: (0, i))
        cparams = pltpu.CompilerParams(dimension_semantics=("parallel",))

        if y is None:
            out_dim = 2 * FD + D
            cost = pl.CostEstimate(
                flops=int(3 * FD * N_pad),
                transcendentals=int(2 * FD * N_pad),
                bytes_accessed=int(4 * (D + out_dim) * N_pad),
            )
            out = pl.pallas_call(
                _make_no_y_kernel(self.scales_py, D),
                out_shape=jax.ShapeDtypeStruct((out_dim, N_pad), self.out_dtype),
                grid=(grid_n,),
                in_specs=[in_spec],
                out_specs=pl.BlockSpec((out_dim, tile), lambda i: (0, i)),
                compiler_params=cparams,
                cost_estimate=cost,
            )(xt)
            # slice fuses into the transpose: no extra pass over the output.
            out = out[:, :N].T
            return out.reshape(lead + (out_dim,))
        else:
            yt = y.reshape(N, D).astype(jnp.float32).T
            if pad:
                yt = jnp.pad(yt, ((0, 0), (0, pad)))
            out_dim = 2 * FD
            out_spec = pl.BlockSpec((out_dim, tile), lambda i: (0, i))
            cost = pl.CostEstimate(
                flops=int(14 * FD * N_pad),
                transcendentals=int(3 * FD * N_pad),
                bytes_accessed=int(4 * (2 * D + 2 * out_dim) * N_pad),
            )
            x_ret, y_ret = pl.pallas_call(
                _make_with_y_kernel(self.scales_py, D),
                out_shape=(
                    jax.ShapeDtypeStruct((out_dim, N_pad), self.out_dtype),
                    jax.ShapeDtypeStruct((out_dim, N_pad), self.out_dtype),
                ),
                grid=(grid_n,),
                in_specs=[in_spec, in_spec],
                out_specs=(out_spec, out_spec),
                compiler_params=cparams,
                cost_estimate=cost,
            )(xt, yt)
            x_ret = x_ret[:, :N].T.reshape(lead + (out_dim,))
            y_ret = y_ret[:, :N].T.reshape(lead + (out_dim,))
            return x_ret, y_ret


# ---------------- pure-JAX reference (mirrors the torch code) ----------------
def _ref_forward(scales, x, y=None):
    shape = list(x.shape[:-1]) + [-1]
    x_enc = (x[..., None, :] * scales[:, None]).reshape(shape)
    x_enc = jnp.concatenate((x_enc, x_enc + 0.5 * jnp.pi), -1)
    if y is not None:
        y_enc = (y[..., None, :] * scales[:, None] ** 2).reshape(shape)
        y_enc = jnp.concatenate((y_enc, y_enc), -1)
        x_ret = jnp.exp(-0.5 * y_enc) * jnp.sin(x_enc)
        y_ret = jnp.maximum(
            jnp.zeros_like(y_enc),
            0.5 * (1 - jnp.exp(-2 * y_enc) * jnp.cos(2 * x_enc)) - x_ret ** 2,
        )
        return x_ret, y_ret
    x_ret = jnp.sin(x_enc)
    return jnp.concatenate((x_ret, x), -1)


if __name__ == "__main__":
    key = jax.random.PRNGKey(0)
    kx, ky, kx2 = jax.random.split(key, 3)

    # NeRF-ish shapes: 4 rays x 256 samples x 3D coords, 4 frequencies.
    # N = 1024 lanes -> _tiling gives 2 grid steps of 512 lanes (no pad).
    B, S, D = 4, 256, 3
    num_freqs = 4
    x = jax.random.normal(kx, (B, S, D), dtype=jnp.float32)
    y = jax.random.uniform(ky, (B, S, D), dtype=jnp.float32) * 0.1  # variances >= 0

    pe = PositionalEncodingMIP(num_freqs, min_deg=0)

    # branch 1: y is None
    out = jax.block_until_ready(pe(x))
    assert out.shape == (B, S, pe.get_embedding_dim(D))
    ref = _ref_forward(pe.scales, x)
    assert jnp.allclose(out, ref, atol=1e-5, rtol=1e-5)

    # branch 2: with y (integrated positional encoding)
    x_ret, y_ret = pe(x, y)
    x_ret = jax.block_until_ready(x_ret)
    y_ret = jax.block_until_ready(y_ret)
    x_ref, y_ref = _ref_forward(pe.scales, x, y)
    assert x_ret.shape == (B, S, 2 * D * num_freqs)
    assert y_ret.shape == (B, S, 2 * D * num_freqs)
    assert jnp.allclose(x_ret, x_ref, atol=1e-5, rtol=1e-5)
    assert jnp.allclose(y_ret, y_ref, atol=1e-5, rtol=1e-5)

    # small ragged case: single 128-lane block, tail columns sliced off (fused
    # into the wrapper transpose, no extra output pass)
    xs = jax.random.normal(kx2, (2, 5, D), dtype=jnp.float32)
    outs = jax.block_until_ready(pe(xs))
    assert jnp.allclose(outs, _ref_forward(pe.scales, xs), atol=1e-5, rtol=1e-5)

    print("KERNEL_OK")
</pallas_src>

<mosaic_0001>
module attributes {stable_mosaic.version = 11 : i64} {
  func.func @kernel(%arg0: i32, %arg1: memref<3x512xf32, #tpu.memory_space<vmem>>, %arg2: memref<27x512xf32, #tpu.memory_space<vmem>>) attributes {dimension_semantics = [#tpu.dimension_semantics<parallel>], iteration_bounds = array<i64: 2>, scalar_prefetch = 0 : i64, scratch_operands = 0 : i64, tpu.core_type = #tpu.core_type<tc>, window_params = [{transform_indices = @transform_0, window_bounds = array<i64: 3, 512>}, {transform_indices = @transform_1, window_bounds = array<i64: 27, 512>}]} {
    %c0 = arith.constant 0 : index
    %c0_0 = arith.constant 0 : index
    %0 = vector.load %arg1[%c0, %c0_0] : memref<3x512xf32, #tpu.memory_space<vmem>>, vector<3x512xf32>
    %cst = arith.constant 1.000000e+00 : f32
    %1 = vector.broadcast %cst : f32 to vector<3x512xf32>
    %2 = arith.mulf %0, %1 : vector<3x512xf32>
    %cst_1 = arith.constant 2.000000e+00 : f32
    %3 = vector.broadcast %cst_1 : f32 to vector<3x512xf32>
    %4 = arith.mulf %0, %3 : vector<3x512xf32>
    %cst_2 = arith.constant 4.000000e+00 : f32
    %5 = vector.broadcast %cst_2 : f32 to vector<3x512xf32>
    %6 = arith.mulf %0, %5 : vector<3x512xf32>
    %cst_3 = arith.constant 8.000000e+00 : f32
    %7 = vector.broadcast %cst_3 : f32 to vector<3x512xf32>
    %8 = arith.mulf %0, %7 : vector<3x512xf32>
    %9 = tpu.concatenate %2, %4, %6, %8 in 0 : vector<3x512xf32>, vector<3x512xf32>, vector<3x512xf32>, vector<3x512xf32> -> vector<12x512xf32>
    %10 = math.sin %9 : vector<12x512xf32>
    %c0_4 = arith.constant 0 : index
    %c0_5 = arith.constant 0 : index
    %11 = vector.load %arg2[%c0_4, %c0_5] : memref<27x512xf32, #tpu.memory_space<vmem>>, vector<12x512xf32>
    tpu.vector_store %arg2[%c0_4, %c0_5], %10 {strides = array<i32>} : memref<27x512xf32, #tpu.memory_space<vmem>>, vector<12x512xf32>,
    %12 = math.cos %9 : vector<12x512xf32>
    %c12 = arith.constant 12 : index
    %c0_6 = arith.constant 0 : index
    %13 = vector.load %arg2[%c12, %c0_6] : memref<27x512xf32, #tpu.memory_space<vmem>>, vector<12x512xf32>
    tpu.vector_store %arg2[%c12, %c0_6], %12 {strides = array<i32>} : memref<27x512xf32, #tpu.memory_space<vmem>>, vector<12x512xf32>,
    %c24 = arith.constant 24 : index
    %c0_7 = arith.constant 0 : index
    %14 = vector.load %arg2[%c24, %c0_7] : memref<27x512xf32, #tpu.memory_space<vmem>>, vector<3x512xf32>
    tpu.vector_store %arg2[%c24, %c0_7], %0 {strides = array<i32>} : memref<27x512xf32, #tpu.memory_space<vmem>>, vector<3x512xf32>,
    return
  }
  func.func @transform_0(%arg0: i32) -> (i32, i32) {
    %c0_i32 = arith.constant 0 : i32
    %c0_i32_0 = arith.constant 0 : i32
    return %c0_i32, %arg0 : i32, i32
  }
  func.func @transform_1(%arg0: i32) -> (i32, i32) {
    %c0_i32 = arith.constant 0 : i32
    %c0_i32_0 = arith.constant 0 : i32
    return %c0_i32, %arg0 : i32, i32
  }
}

</mosaic_0001>

<bundles_post_ra>
// kernel: tpu_custom_call.1
= control target key start
LH: loop header
LB: loop body
LE: loop exit
PB: predicated region body
PF: predicated region fallthrough
CT: control target
= control target key end

     0   :  { %6 = vsyncpa [#allocation3], 0  ;;  %s4339_s0 = inlined_call_operand.hbm [shape: f32[3,1024], index: 0, kind: input, shape index: {}]   ;;  %s4340_s1 = inlined_call_operand.hbm [shape: f32[27,1024], index: 1, kind: output, shape index: {}]  }
   0x1   :  { %8 = vsyncpa [#allocation3 + $0x1], 0 }
   0x2   :  { %9 = vsyncpa [#allocation4], 0 }
   0x3   :  { %11 = vsyncpa [#allocation4 + $0x1], 0  ;;  %s3083_s6 = smov 0   ;;  %s3085_s7 = smov 0  }
   0x4   :  { %s3087_s8 = smov 0   ;;  %s3089_s9 = smov 0  }
   0x5 LB: > { %s3104_s10 = sadd.s32 4294967295, %s3061_s9   ;;  %s2845_s11 = sadd.s32 4294967294, %s3061_s9   ;;  %s3061_s9 = sphi %s3089_s9, %s4362_s9   ;;  %s3057_s8 = sphi %s3087_s8, %s4361_s8   ;;  %s3053_s7 = sphi %s3085_s7, %s4360_s7   ;;  %s3049_s6 = sphi %s3083_s6, %s4359_s6  }
   0x6   : > { %s3108_s12 = sadd.s32 1, %s3061_s9   ;;  %s24_s13 = sadd.s32 1, %s3057_s8 }
   0x7   : > { %s21_s14 = ssub.s32 %s3061_s9, %s3108_s12  ;;  %p31_p0 = scmp.ne.s32.totalorder %s3057_s8, %s3053_s7 }
   0x8   : > { %p22_p1 = scmp.eq.s32.totalorder %s21_s14, 0  ;;  %p32_p2 = scmp.eq.s32.totalorder %s3061_s9, 0 }
   0x9   : > { %p37_p3 = scmp.ne.s32.totalorder %s3053_s7, %s3049_s6  ;;  %p38_p4 = scmp.eq.s32.totalorder %s3104_s10, 0 }
   0xa   : > { %s3120_s15 = scalar_select %p22_p1, %s3057_s8, %s24_s13  }
   0xb   : > { %p3122_p5 = por %p32_p2, %p31_p0  ;;  %p3126_p6 = por %p38_p4, %p37_p3 }
   0xc   : > { %p61_p7 = scmp.eq.s32.totalorder %s3104_s10, 1  ;;  %p67_p8 = scmp.eq.s32.totalorder %s2845_s11, 1 }
   0xd   : > { %p2921_p10 = scmp.lt.s32.totalorder %s3061_s9, 2  ;;  %s87_s20 = sand.u32 1, %s3057_s8  }
   0xe   : > { %p3133_p11 = por %p61_p7, %p31_p0  ;;  %p3137_p12 = por %p67_p8, %p37_p3 }
   0xf   : > { %s2907_s21 = sshll.u32 %s3061_s9, 4  ;;  %s2848_s22 = sshll.u32 %s87_s20, 4 }
  0x10   : > { %s96_s25 = scalar_lea.hbm %s4339_s0, %s2907_s21  ;;  %s91_s27 = scalar_lea.vmem [#allocation2], %s2848_s22 }
  0x11   : > { %s98_s26 = sshll.u32 %s96_s25, 4  ;;  %s100_s28 = sshll.u32 %s91_s27, 4  ;;  %s99_s26 = int_to_ptr.hbm [resolvable:$true] %s98_s26  ;;  %s101_s28 = int_to_ptr.vmem [resolvable:$true] %s100_s28 }
  0x12   : > { %p3148_p13 = pnand %p2921_p10, %p3122_p5  ;;  %p2851_p0 = scmp.ge.s32.totalorder %s3061_s9, 1 }
  0x13   : > { %p105_p1 = scmp.lt.s32.totalorder %s3061_s9, 3  ;;  %s88_s30 = scalar_lea.sflag [#allocation3], %s87_s20 }
  0x14   : > { %s2965_s2 = sshra.s32 %s99_s26, 4  ;;  %p2969_p3 = pneg %p3148_p13  ;;  %s2966_s2 = int_to_ptr.hbm [resolvable:$true] %s2965_s2 }
  0x15   : > { %s2967_s3 = scalar_lea.hbm %s2966_s2, 16  ;;  %s2972_s11 = scalar_lea.hbm %s4339_s0, 32 }
  0x16   : > { %p2968_p2 = scmp.ne.s32.totalorder %s2966_s2, %s2967_s3  ;;  %p2973_p5 = scmp.lt.s32.totalorder %s2966_s2, %s4339_s0 }
  0x17   : > { %p2974_p8 = scmp.lt.s32.totalorder %s2972_s11, %s2967_s3 }
  0x18   : > { %p2970_p4 = pnand %p2969_p3, %p2968_p2 }
  0x19   : > { %p2975_p10 = por %p2974_p8, %p2973_p5 }
  0x1a   : > { %p2971_p7 = pneg %p2970_p4 }
  0x1c   : > { %p2976_p9 = pnand %p2975_p10, %p2971_p7 }
  0x1e   : > { %2979 = shalt.err (!%p2976_p9)
}
  0x1f   : > { %2916 = dma.hbm_to_vmem [thread:$0]  (!%p3148_p13), %s99_s26, 256, %s101_s28, %s88_s30  }
  0x20   : > { %p106_p2 = pnand %p2851_p0, %p105_p1 }
  0x21   : > { %s3169_s16 = sand.u32 (!%p106_p2), 1, %s3053_s7  }
  0x22   : > { %109 = sbr.rel (%p106_p2) target bundleno = 433 (0x1b1), region = 24  ;;  %s2852_s20 = sshll.u32 (!%p106_p2), %s3169_s16, 4 }
  0x23   : > { %s112_s21 = scalar_lea.sflag (!%p106_p2), [#allocation3], %s3169_s16  ;;  %s115_s22 = scalar_lea.vmem (!%p106_p2), [#allocation2], %s2852_s20 }
  0x27   : > { %3040 = dma.done.wait (%p3126_p6), %s112_s21, 256  }
  0x28   : > { %3042 = vsyncadd (%p3126_p6), %s112_s21, 4294967040  ;;  %v3177_v0 = vld [vmem:[%s115_s22] sm:$0x77]  ;;  %v3179_v1 = vld [vmem:[%s115_s22 + $0x8] sm:$0x77]  ;;  %vm209_vm0 = vcmask 1042432  }
  0x29   : > { %147 = vst [vmem:[#allocation1] ss:$2 sm:$0xff] %v3177_v0  ;;  %v139_v2 = vmul.f32 2.0, %v3177_v0  ;;  %v140_v3 = vmul.f32 2.0, %v3179_v1  ;;  %v141_v8 = vmul.f32 4.0, %v3177_v0  ;;  %v142_v9 = vmul.f32 4.0, %v3179_v1 }
  0x2a   : > { %149 = vst [vmem:[#allocation1 + $0x10] ss:$2 sm:$0xff] %v3179_v1  ;;  %v143_v14 = vmul.f32 8.0, %v3177_v0  ;;  %v144_v17 = vmul.f32 8.0, %v3179_v1  ;;  %vm214_vm1 = vcmask 1045504   ;;  %s2853_s17 = sshll.u32 %s3169_s16, 7 }
  0x2b   : > { %v3063_v59 = vmov 683565275   ;;  %v3064_v61 = vmov 2475754826   ;;  %s3572_s23 = scalar_lea.vmem [#allocation5], %s2853_s17  ;;  %s2908_s24 = sshll.u32 %s3104_s10, 5 }
  0x2c   : > { %s2768_s27 = scalar_lea.hbm %s4340_s1, %s2908_s24  ;;  %s2769_s28 = sshll.u32 %s3572_s23, 4  ;;  %s2770_s28 = int_to_ptr.vmem [resolvable:$true] %s2769_s28 }
  0x2d   : > { %s2771_s10 = sshll.u32 %s2768_s27, 4  ;;  %s2757_s29 = scalar_lea.sflag [#allocation4], %s3169_s16  ;;  %s2772_s10 = int_to_ptr.hbm [resolvable:$true] %s2771_s10 }
  0x2e   : > { %s3009_s30 = sshra.s32 %s2772_s10, 4  ;;  %s3015_s5 = scalar_lea.hbm %s4340_s1, 256  ;;  %s3010_s30 = int_to_ptr.hbm [resolvable:$true] %s3009_s30 }
  0x2f   : > { %s3011_s2 = scalar_lea.hbm %s3010_s30, 128  ;;  %p3016_p0 = scmp.lt.s32.totalorder %s3010_s30, %s4340_s1 }
  0x30   : > { %v150_v4 = vld.sshfl [vmem:[#allocation1] sm:$0xff pattern:$0x75316420]  ;;  %v151_v5 = vld.sshfl [vmem:[#allocation1 + $0x8] sm:$0xff pattern:$0x75316420]  ;;  %p3012_p6 = scmp.ne.s32.totalorder %s3010_s30, %s3011_s2  ;;  %p3017_p1 = scmp.lt.s32.totalorder %s3015_s5, %s3011_s2 }
  0x31   : > { %160 = vst [vmem:[#allocation1] ss:$2 sm:$0xff] %v139_v2  ;;  %v152_v6 = vld.sshfl [vmem:[#allocation1 + $0x10] sm:$0xff pattern:$0x75316420] }
  0x32   : > { %v3185_v7 = vld.sshfl [vmem:[#allocation1 + $0x18] sm:$0xff pattern:$0x75316420]  ;;  %p3013_p9 = pnand %p3012_p6, %p3133_p11  ;;  %p3018_p3 = por %p3017_p1, %p3016_p0 }
  0x33   : > { %162 = vst [vmem:[#allocation1 + $0x10] ss:$2 sm:$0xff] %v140_v3  ;;  %v3065_v3 = vmov 2131351028  }
  0x34   : > { %p3014_p13 = pneg %p3013_p9 }
  0x36   : > { %p3019_p4 = pnand %p3018_p3, %p3014_p13 }
  0x38   : > { %v163_v10 = vld.sshfl [vmem:[#allocation1] sm:$0xff pattern:$0x75316420]  ;;  %v164_v11 = vld.sshfl [vmem:[#allocation1 + $0x8] sm:$0xff pattern:$0x75316420] }
  0x39   : > { %177 = vst [vmem:[#allocation1] ss:$2 sm:$0xff] %v141_v8  ;;  %v167_v15 = vrot.slane %v163_v10, 5  ;;  %v168_v16 = vrot.slane %v164_v11, 5  ;;  %v3067_v10 = vmov 920167782  }
  0x3a   : > { %v165_v12 = vld.sshfl [vmem:[#allocation1 + $0x10] sm:$0xff pattern:$0x75316420]  ;;  %v3189_v13 = vld.sshfl [vmem:[#allocation1 + $0x18] sm:$0xff pattern:$0x75316420] }
  0x3b   : > { %179 = vst [vmem:[#allocation1 + $0x10] ss:$2 sm:$0xff] %v142_v9  ;;  %v169_v22 = vrot.slane %v165_v12, 5  ;;  %v210_v25 = vsel %vm209_vm0, %v150_v4, %v167_v15  ;;  %v211_v26 = vsel %vm209_vm0, %v151_v5, %v168_v16 }
  0x3d   : > { %v212_v34 = vsel %vm209_vm0, %v152_v6, %v169_v22  ;;  %v3066_v6 = vmov 2102212464  }
  0x40   : > { %v3193_v18 = vld.sshfl [vmem:[#allocation1] sm:$0xff pattern:$0x75316420]  ;;  %v3195_v19 = vld.sshfl [vmem:[#allocation1 + $0x8] sm:$0xff pattern:$0x75316420] }
  0x41   : > { %194 = vst [vmem:[#allocation1] ss:$2 sm:$0xff] %v143_v14  ;;  %v184_v20 = vrot.slane %v3193_v18, 2  ;;  %v185_v21 = vrot.slane %v3195_v19, 2  ;;  %v3068_v14 = vmov 1326507024  }
  0x42   : > { %v3199_v23 = vld.sshfl [vmem:[#allocation1 + $0x10] sm:$0xff pattern:$0x75316420]  ;;  %v3201_v24 = vld.sshfl [vmem:[#allocation1 + $0x18] sm:$0xff pattern:$0x75316420] }
  0x43   : > { %196 = vst [vmem:[#allocation1 + $0x10] ss:$2 sm:$0xff] %v144_v17  ;;  %v3208_v27 = vsel %vm214_vm1, %v210_v25, %v184_v20  ;;  %v3213_v28 = vsel %vm214_vm1, %v211_v26, %v185_v21  ;;  %v186_v29 = vrot.slane %v3199_v23, 2 }
  0x44   : > { %v224_v30 = vand.u32 2147483647, %v3208_v27  ;;  %v227_v31 = vand.u32 2139095040, %v3208_v27  ;;  %v379_v32 = vand.u32 2147483647, %v3213_v28  ;;  %v382_v33 = vand.u32 2139095040, %v3213_v28 }
  0x45   : > { %v3226_v37 = vsel %vm214_vm1, %v212_v34, %v186_v29 }
  0x46   : > { %v228_v35 = vshrl.u32 %v227_v31, 23  ;;  %v231_v36 = vand.u32 8388607, %v224_v30  ;;  %v383_v38 = vshrl.u32 %v382_v33, 23  ;;  %v386_v39 = vand.u32 8388607, %v379_v32 }
  0x47   : > { %v537_v42 = vand.u32 2139095040, %v3226_v37 }
  0x48   : > { %v2854_v40 = vadd.s32 4294967169, %v228_v35  ;;  %v232_v41 = vor.u32 8388608, %v231_v36  ;;  %v2857_v43 = vadd.s32 4294967169, %v383_v38  ;;  %v387_v44 = vor.u32 8388608, %v386_v39 }
  0x49   : > { %v538_v48 = vshrl.u32 %v537_v42, 23 }
  0x4a   : > { %v234_v45 = vadd.s32 1, %v2854_v40  ;;  %v3231_v46 = vshll.u32 %v232_v41, 8  ;;  %v389_v47 = vadd.s32 1, %v2857_v43  ;;  %v3233_v50 = vshll.u32 %v387_v44, 8 }
  0x4b   : > { %v3243_v57 = vadd.s32 4294967169, %v538_v48 }
  0x4c   : > { %vm235_vm2 = vcmp.gt.s32.totalorder %v234_v45, 0  ;;  %vm390_vm3 = vcmp.gt.s32.totalorder %v389_v47, 0  ;;  %v3236_v53 = vand.u32 65535, %v3231_v46  ;;  %v3239_v55 = vshrl.u32 %v3231_v46, 16 }
  0x4d   : > { %v236_v49 = vsel %vm235_vm2, %v234_v45, 0  ;;  %v391_v52 = vsel %vm390_vm3, %v389_v47, 0  ;;  %v3250_v63 = vand.u32 65535, %v3233_v50 }
  0x4e   : > { %v238_v51 = vand.u32 31, %v236_v49  ;;  %v3241_v56 = vand.u32 31, %v391_v52  ;;  %v3245_v58 = vshrl.u32 %v236_v49, 5 }
  0x50   : > { %v239_v54 = vsub.s32 32, %v238_v51  ;;  %v241_v60 = vshll.u32 %v3063_v59, %v238_v51  ;;  %v244_v62 = vshll.u32 %v3064_v61, %v238_v51  ;;  %v247_v5 = vshll.u32 %v3065_v3, %v238_v51 }
  0x51   : > { %v250_v9 = vshll.u32 %v3066_v6, %v238_v51  ;;  %v253_v12 = vshll.u32 %v3067_v10, %v238_v51  ;;  %v3261_v25 = vsub.s32 32, %v3241_v56  ;;  %vm256_vm4 = vcmp.lt.s32.totalorder %v3245_v58, 1 }
  0x52   : > { %v242_v2 = vshrl.u32 %v3064_v61, %v239_v54  ;;  %v245_v4 = vshrl.u32 %v3065_v3, %v239_v54  ;;  %v248_v8 = vshrl.u32 %v3066_v6, %v239_v54  ;;  %v251_v11 = vshrl.u32 %v3067_v10, %v239_v54 }
  0x53   : > { %v254_v15 = vshrl.u32 %v3068_v14, %v239_v54  ;;  %vm257_vm5 = vcmp.lt.s32.totalorder %v3245_v58, 2  ;;  %v240_v33 = vshrl.u32 %v3063_v59, %v239_v54  ;;  %vm259_vm6 = vcmp.lt.s32.totalorder %v3245_v58, 4 }
  0x54   : > { %v243_v16 = vor.u32 %v242_v2, %v241_v60  ;;  %v246_v17 = vor.u32 %v245_v4, %v244_v62  ;;  %v249_v22 = vor.u32 %v248_v8, %v247_v5  ;;  %v252_v26 = vor.u32 %v251_v11, %v250_v9 }
  0x55   : > { %v255_v31 = vor.u32 %v254_v15, %v253_v12  ;;  %vm258_vm7 = vcmp.lt.s32.totalorder %v3245_v58, 3  ;;  %v396_v39 = vshll.u32 %v3063_v59, %v3241_v56  ;;  %v397_v43 = vshrl.u32 %v3064_v61, %v3261_v25 }
  0x56   : > { %v264_v34 = vsel %vm256_vm4, %v243_v16, %v246_v17  ;;  %v268_v35 = vsel %vm256_vm4, %v246_v17, %v249_v22  ;;  %v265_v36 = vsel %vm259_vm6, %v252_v26, 920167782  ;;  %v261_v40 = vsel %vm259_vm6, %v249_v22, 2102212464 }
  0x57   : > { %v269_v38 = vsel %vm259_vm6, %v255_v31, 1326507024  ;;  %v266_v41 = vsel %vm258_vm7, %v249_v22, %v265_v36  ;;  %v399_v47 = vshll.u32 %v3064_v61, %v3241_v56  ;;  %v400_v48 = vshrl.u32 %v3065_v3, %v3261_v25 }
  0x58   : > { %v270_v42 = vsel %vm258_vm7, %v252_v26, %v269_v38  ;;  %v267_v44 = vsel %vm257_vm5, %v264_v34, %v266_v41  ;;  %v260_v62 = vsel %vm256_vm4, %v240_v33, %v243_v16  ;;  %v262_v2 = vsel %vm258_vm7, %v246_v17, %v261_v40 }
  0x59   : > { %v271_v45 = vsel %vm257_vm5, %v268_v35, %v270_v42  ;;  %v297_v54 = vand.u32 65535, %v267_v44  ;;  %v298_v60 = vshrl.u32 %v267_v44, 16  ;;  %v3292_v4 = vshrl.u32 %v391_v52, 5 }
  0x5a   : > { %v275_v49 = vand.u32 65535, %v271_v45  ;;  %v276_v51 = vshrl.u32 %v271_v45, 16  ;;  %v3294_v5 = vor.u32 %v397_v43, %v396_v39  ;;  %v3298_v11 = vor.u32 %v400_v48, %v399_v47 }
  0x5b   : > { %v403_v12 = vshrl.u32 %v3066_v6, %v3261_v25  ;;  %v300_v16 = vmul.u32 %v298_v60, %v3236_v53  ;;  %v301_v22 = vmul.u32 %v297_v54, %v3239_v55  ;;  %v402_v52 = vshll.u32 %v3065_v3, %v3241_v56 }
  0x5c   : > { %v278_v8 = vmul.u32 %v276_v51, %v3236_v53  ;;  %v279_v9 = vmul.u32 %v275_v49, %v3239_v55  ;;  %v277_v15 = vmul.u32 %v275_v49, %v3236_v53  ;;  %v280_v17 = vmul.u32 %v276_v51, %v3239_v55 }
  0x5d   : > { %v299_v31 = vmul.u32 %v297_v54, %v3236_v53  ;;  %v302_v33 = vmul.u32 %v298_v60, %v3239_v55  ;;  %v303_v38 = vshll.u32 %v300_v16, 16  ;;  %v305_v40 = vshll.u32 %v301_v22, 16 }
  0x5e   : > { %v281_v26 = vshll.u32 %v278_v8, 16  ;;  %v282_v34 = vshrl.u32 %v278_v8, 16  ;;  %v283_v35 = vshll.u32 %v279_v9, 16  ;;  %v284_v36 = vshrl.u32 %v279_v9, 16 }
  0x5f   : > { %v3310_v41 = vor.u32 %v403_v12, %v402_v52  ;;  %v3069_v42 = vmov 0   ;;  %vm307_vm9 = vc.u32 %v299_v31, %v303_v38  ;;  %v309_v44 = vadd.s32 %v303_v38, %v299_v31 }
  0x60   : > { %vm285_vm8 = vc.u32 %v277_v15, %v281_v26  ;;  %v287_v39 = vadd.s32 %v281_v26, %v277_v15  ;;  %v406_v45 = vshrl.u32 %v3067_v10, %v3261_v25  ;;  %v308_v55 = vsel %vm307_vm9, 1, %v3069_v42 }
  0x61   : > { %v286_v43 = vsel %vm285_vm8, 1, %v3069_v42  ;;  %v405_v47 = vshll.u32 %v3066_v6, %v3241_v56  ;;  %v310_v49 = vadd.s32 %v308_v55, %v302_v33  ;;  %vm311_vm11 = vc.u32 %v309_v44, %v305_v40 }
  0x62   : > { %v288_v53 = vadd.s32 %v286_v43, %v280_v17  ;;  %vm289_vm10 = vc.u32 %v287_v39, %v283_v35  ;;  %v408_v51 = vshll.u32 %v3067_v10, %v3241_v56  ;;  %v312_v60 = vsel %vm311_vm11, 1, %v3069_v42 }
  0x63   : > { %v290_v48 = vsel %vm289_vm10, 1, %v3069_v42  ;;  %v407_v8 = vor.u32 %v406_v45, %v405_v47  ;;  %v409_v9 = vshrl.u32 %v3068_v14, %v3261_v25  ;;  %v304_v12 = vshrl.u32 %v300_v16, 16 }
  0x64   : > { %v292_v54 = vadd.s32 %v290_v48, %v288_v53  ;;  %v306_v15 = vshrl.u32 %v301_v22, 16  ;;  %v3324_v52 = vadd.s32 %v309_v44, %v305_v40  ;;  %v314_v17 = vadd.s32 %v312_v60, %v310_v49 }
  0x65   : > { %v410_v31 = vor.u32 %v409_v9, %v408_v51  ;;  %vm411_vm12 = vcmp.lt.s32.totalorder %v3292_v4, 1  ;;  %vm414_vm13 = vcmp.lt.s32.totalorder %v3292_v4, 4  ;;  %vm413_vm14 = vcmp.lt.s32.totalorder %v3292_v4, 3 }
  0x66   : > { %v293_v26 = vadd.s32 %v292_v54, %v282_v34  ;;  %v315_v33 = vadd.s32 %v314_v17, %v304_v12  ;;  %v419_v56 = vsel %vm411_vm12, %v3294_v5, %v3298_v11  ;;  %v420_v16 = vsel %vm414_vm13, %v407_v8, 920167782 }
  0x67   : > { %vm412_vm15 = vcmp.lt.s32.totalorder %v3292_v4, 2  ;;  %v421_v34 = vsel %vm413_vm14, %v3310_v41, %v420_v16  ;;  %v423_v35 = vsel %vm411_vm12, %v3298_v11, %v3310_v41  ;;  %v263_v38 = vsel %vm257_vm5, %v260_v62, %v262_v2 }
  0x68   : > { %v3335_v22 = vadd.s32 %v293_v26, %v284_v36  ;;  %v316_v39 = vadd.s32 %v315_v33, %v306_v15  ;;  %v422_v40 = vsel %vm412_vm15, %v419_v56, %v421_v34  ;;  %v424_v36 = vsel %vm414_vm13, %v410_v31, 1326507024 }
  0x69   : > { %v425_v43 = vsel %vm413_vm14, %v407_v8, %v424_v36  ;;  %v429_v44 = vshrl.u32 %v3233_v50, 16  ;;  %v452_v45 = vand.u32 65535, %v422_v40  ;;  %v453_v62 = vshrl.u32 %v422_v40, 16 }
  0x6a   : > { %vm319_vm2 = vc.u32 %v3335_v22, %v3324_v52  ;;  %v320_v53 = vadd.s32 1, %v316_v39  ;;  %v426_v58 = vsel %vm412_vm15, %v423_v35, %v425_v43  ;;  %v544_v2 = vadd.s32 1, %v3243_v57 }
  0x6b   : > { %v317_v55 = vmul.u32 %v3231_v46, %v263_v38  ;;  %v430_v47 = vand.u32 65535, %v426_v58  ;;  %v431_v48 = vshrl.u32 %v426_v58, 16  ;;  %v455_v51 = vmul.u32 %v453_v62, %v3250_v63 }
  0x6c   : > { %v321_v49 = vsel %vm319_vm2, %v320_v53, %v316_v39  ;;  %v456_v54 = vmul.u32 %v452_v45, %v429_v44  ;;  %v534_v12 = vand.u32 2147483647, %v3226_v37  ;;  %v454_v15 = vmul.u32 %v452_v45, %v3250_v63 }
  0x6d   : > { %v322_v60 = vadd.s32 %v321_v49, %v317_v55  ;;  %v433_v8 = vmul.u32 %v431_v48, %v3250_v63  ;;  %v434_v9 = vmul.u32 %v430_v47, %v429_v44  ;;  %v457_v17 = vmul.u32 %v453_v62, %v429_v44 }
  0x6e   : > { %v458_v26 = vshll.u32 %v455_v51, 16  ;;  %vm545_vm3 = vcmp.gt.s32.totalorder %v544_v2, 0  ;;  %v432_v46 = vmul.u32 %v430_v47, %v3250_v63  ;;  %v435_v31 = vmul.u32 %v431_v48, %v429_v44 }
  0x6f   : > { %v323_v57 = vadd.s32 536870912, %v322_v60  ;;  %v436_v33 = vshll.u32 %v433_v8, 16  ;;  %v438_v56 = vshll.u32 %v434_v9, 16  ;;  %v460_v16 = vshll.u32 %v456_v54, 16 }
  0x70   : > { %vm462_vm4 = vc.u32 %v454_v15, %v458_v26  ;;  %v464_v34 = vadd.s32 %v458_v26, %v454_v15  ;;  %v395_v40 = vshrl.u32 %v3063_v59, %v3261_v25  ;;  %v416_v63 = vsel %vm414_vm13, %v3310_v41, 2102212464 }
  0x71   : > { %v324_v35 = vshrl.u32 %v323_v57, 30  ;;  %vm440_vm5 = vc.u32 %v432_v46, %v436_v33  ;;  %v442_v38 = vadd.s32 %v436_v33, %v432_v46  ;;  %v463_v39 = vsel %vm462_vm4, 1, %v3069_v42 }
  0x72   : > { %v441_v36 = vsel %vm440_vm5, 1, %v3069_v42  ;;  %v465_v43 = vadd.s32 %v463_v39, %v457_v17  ;;  %vm466_vm6 = vc.u32 %v464_v34, %v460_v16  ;;  %v546_v62 = vsel %vm545_vm3, %v544_v2, 0 }
  0x73   : > { %v325_v45 = vshll.u32 %v324_v35, 30  ;;  %v443_v44 = vadd.s32 %v441_v36, %v435_v31  ;;  %vm444_vm7 = vc.u32 %v442_v38, %v438_v56  ;;  %v467_v58 = vsel %vm466_vm6, 1, %v3069_v42 }
  0x74   : > { %v445_v53 = vsel %vm444_vm7, 1, %v3069_v42  ;;  %v415_v25 = vsel %vm411_vm12, %v395_v40, %v3294_v5  ;;  %v469_v48 = vadd.s32 %v467_v58, %v465_v43  ;;  %v417_v49 = vsel %vm413_vm14, %v3298_v11, %v416_v63 }
  0x75   : > { %v326_v55 = vsub.s32 %v322_v60, %v325_v45  ;;  %v447_v47 = vadd.s32 %v445_v53, %v443_v44  ;;  %v437_v41 = vshrl.u32 %v433_v8, 16  ;;  %v459_v15 = vshrl.u32 %v455_v51, 16 }
  0x76   : > { %v548_v17 = vand.u32 31, %v546_v62  ;;  %v541_v57 = vand.u32 8388607, %v534_v12  ;;  %v439_v2 = vshrl.u32 %v434_v9, 16  ;;  %v461_v46 = vshrl.u32 %v456_v54, 16 }
  0x77   : > { %vm327_vm8 = vcmp.lt.s32.totalorder %v326_v55, 0  ;;  %v328_v26 = vsub.s32 0, %v326_v55  ;;  %v448_v60 = vadd.s32 %v447_v47, %v437_v41  ;;  %v470_v31 = vadd.s32 %v469_v48, %v459_v15 }
  0x78   : > { %v348_v5 = vsub.s32 4, %v324_v35  ;;  %v418_v56 = vsel %vm412_vm15, %v415_v25, %v417_v49  ;;  %v3385_v38 = vsub.s32 32, %v548_v17  ;;  %v3389_v51 = vadd.s32 %v464_v34, %v460_v16 }
  0x79   : > { %v329_v33 = vsel %vm327_vm8, %v328_v26, %v326_v55  ;;  %v3387_v8 = vadd.s32 %v448_v60, %v439_v2  ;;  %v471_v39 = vadd.s32 %v470_v31, %v461_v46  ;;  %vm3393_vm9 = vcmp.le.f32.partialorder %v224_v30, 0.7853982 }
  0x7a   : > { %v330_v11 = vclz %v329_v33  ;;  %vm226_vm10 = vcmp.lt.s32.totalorder %v3208_v27, 0  ;;  %v542_v40 = vor.u32 8388608, %v541_v57  ;;  %v318_v36 = vadd.s32 %v3324_v52, %v3335_v22 }
  0x7b   : > { %vm474_vm11 = vc.u32 %v3387_v8, %v3389_v51  ;;  %v475_v4 = vadd.s32 1, %v471_v39  ;;  %v349_v16 = vsel %vm226_vm10, %v348_v5, %v324_v35  ;;  %v472_v34 = vmul.u32 %v3233_v50, %v418_v56 }
  0x7c   : > { %v2855_v54 = vadd.s32 4294967294, %v330_v11  ;;  %v552_v30 = vshrl.u32 %v3064_v61, %v3385_v38  ;;  %v3407_v45 = vshrl.u32 %v546_v62, 5  ;;  %v551_v63 = vshll.u32 %v3063_v59, %v548_v17 }
  0x7d   : > { %v476_v43 = vsel %vm474_vm11, %v475_v4, %v471_v39  ;;  %v555_v58 = vshrl.u32 %v3065_v3, %v3385_v38  ;;  %v558_v52 = vshrl.u32 %v3066_v6, %v3385_v38  ;;  %v554_v50 = vshll.u32 %v3064_v61, %v548_v17 }
  0x7e   : > { %vm2856_vm12 = vcmp.lt.s32.totalorder %v2855_v54, 0  ;;  %v477_v53 = vadd.s32 %v476_v43, %v472_v34  ;;  %v557_v25 = vshll.u32 %v3065_v3, %v548_v17  ;;  %v553_v48 = vor.u32 %v552_v30, %v551_v63 }
  0x7f   : > { %v333_v44 = vsel %vm2856_vm12, 0, %v2855_v54  ;;  %v560_v62 = vshll.u32 %v3066_v6, %v548_v17  ;;  %v561_v49 = vshrl.u32 %v3067_v10, %v3385_v38  ;;  %v564_v57 = vshrl.u32 %v3068_v14, %v3385_v38 }
  0x80   : > { %v334_v22 = vsub.s32 32, %v333_v44  ;;  %v338_v35 = vsub.s32 4294967266, %v333_v44  ;;  %v478_v47 = vadd.s32 536870912, %v477_v53  ;;  %v335_v41 = vshll.u32 %v326_v55, %v333_v44 }
  0x81   : > { %v556_v60 = vor.u32 %v555_v58, %v554_v50  ;;  %v559_v46 = vor.u32 %v558_v52, %v557_v25  ;;  %v562_v31 = vor.u32 %v561_v49, %v560_v62  ;;  %v351_v56 = vsel %vm3393_vm9, 0, %v349_v16 }
  0x82   : > { %v336_v15 = vshrl.u32 %v318_v36, %v334_v22  ;;  %v339_v26 = vadd.s32 127, %v338_v35  ;;  %v3421_v2 = vshrl.u32 %v478_v47, 30  ;;  %v563_v11 = vshll.u32 %v3067_v10, %v548_v17 }
  0x83   : > { %vm566_vm13 = vcmp.lt.s32.totalorder %v3407_v45, 1  ;;  %vm569_vm14 = vcmp.lt.s32.totalorder %v3407_v45, 4  ;;  %v3429_v55 = vshll.u32 %v542_v40, 8  ;;  %vm568_vm15 = vcmp.lt.s32.totalorder %v3407_v45, 3 }
  0x84   : > { %v337_v33 = vor.u32 %v336_v15, %v335_v41  ;;  %v340_v5 = vshll.u32 %v339_v26, 23  ;;  %v480_v39 = vshll.u32 %v3421_v2, 30  ;;  %v565_v4 = vor.u32 %v564_v57, %v563_v11 }
  0x85   : > { %v575_v36 = vsel %vm569_vm14, %v562_v31, 920167782  ;;  %v368_v34 = vadd.s32 3, %v351_v56  ;;  %v574_v17 = vsel %vm566_vm13, %v553_v48, %v556_v60  ;;  %vm567_vm3 = vcmp.lt.s32.totalorder %v3407_v45, 2 }
  0x86   : > { %v341_v54 = vor.u32 4788187, %v340_v5  ;;  %v481_v30 = vsub.s32 %v477_v53, %v480_v39  ;;  %v576_v16 = vsel %vm568_vm15, %v559_v46, %v575_v36  ;;  %v344_v63 = vcvt.s32.f32 %v337_v33 }
  0x87   : > { %v583_v44 = vand.u32 65535, %v3429_v55  ;;  %v3442_v52 = vsel %vm567_vm3, %v574_v17, %v576_v16  ;;  %v578_v53 = vsel %vm566_vm13, %v556_v60, %v559_v46  ;;  %v579_v22 = vsel %vm569_vm14, %v565_v4, 1326507024 }
  0x88   : > { %v342_v43 = vand.u32 2147483647, %v341_v54  ;;  %vm482_vm2 = vcmp.lt.s32.totalorder %v481_v30, 0  ;;  %v483_v40 = vsub.s32 0, %v481_v30  ;;  %v3448_v35 = vand.u32 3, %v368_v34 }
  0x89   : > { %v3450_v50 = vand.u32 3, %v351_v56  ;;  %v550_v47 = vshrl.u32 %v3063_v59, %v3385_v38  ;;  %v473_v49 = vadd.s32 %v3389_v51, %v3387_v8  ;;  %v580_v15 = vsel %vm568_vm15, %v562_v31, %v579_v22 }
  0x8a   : > { %v345_v58 = vmul.f32 %v344_v63, %v342_v43  ;;  %v484_v25 = vsel %vm482_vm2, %v483_v40, %v481_v30  ;;  %v571_v57 = vsel %vm569_vm14, %v559_v46, 2102212464  ;;  %v581_v33 = vsel %vm567_vm3, %v578_v53, %v580_v15 }
  0x8b   : > { %v485_v41 = vclz %v484_v25  ;;  %v3460_v26 = vsel %vm566_vm13, %v550_v47, %v553_v48  ;;  %v607_v38 = vand.u32 65535, %v3442_v52  ;;  %v585_v51 = vand.u32 65535, %v581_v33 }
  0x8c   : > { %v346_v62 = vxor.u32 2147483648, %v345_v58  ;;  %v586_v56 = vshrl.u32 %v581_v33, 16  ;;  %v503_v48 = vsub.s32 4, %v3421_v2  ;;  %v584_v46 = vshrl.u32 %v3429_v55, 16 }
  0x8d   : > { %v2858_v8 = vadd.s32 4294967294, %v485_v41  ;;  %v608_v11 = vshrl.u32 %v3442_v52, 16  ;;  %v3481_v54 = vsel %vm568_vm15, %v556_v60, %v571_v57  ;;  %v609_v9 = vmul.u32 %v607_v38, %v583_v44 }
  0x8e   : > { %v347_v5 = vsel %vm226_vm10, %v346_v62, %v345_v58  ;;  %v588_v4 = vmul.u32 %v586_v56, %v583_v44  ;;  %v3483_v34 = vmul.u32 %v585_v51, %v584_v46  ;;  %v3485_v17 = vmul.u32 %v607_v38, %v584_v46 }
  0x8f   : > { %v3472_v31 = vsel %vm3393_vm9, %v3208_v27, %v347_v5  ;;  %vm2859_vm4 = vcmp.lt.s32.totalorder %v2858_v8, 0  ;;  %v587_v40 = vmul.u32 %v585_v51, %v583_v44  ;;  %vm381_vm5 = vcmp.lt.s32.totalorder %v3213_v28, 0  ;;  %v3492_v51 = vld.sshfl [vmem:[#allocation1] sm:$0xff pattern:$0x75316420] }
  0x90   : > { %v352_v39 = vmul.f32 %v3472_v31, %v3472_v31  ;;  %v488_v36 = vsel %vm2859_vm4, 0, %v2858_v8  ;;  %v590_v52 = vmul.u32 %v586_v56, %v584_v46  ;;  %v591_v53 = vshll.u32 %v588_v4, 16 }
  0x91   : > { %v489_v63 = vsub.s32 32, %v488_v36  ;;  %v493_v58 = vsub.s32 4294967266, %v488_v36  ;;  %v3488_v22 = vmul.u32 %v608_v11, %v583_v44  ;;  %v490_v47 = vshll.u32 %v481_v30, %v488_v36 }
  0x92   : > { %v353_v16 = vmul.f32 -0.001358992, %v352_v39  ;;  %v360_v43 = vmul.f32 -0.00019511016, %v352_v39  ;;  %v593_v15 = vshll.u32 %v3483_v34, 16  ;;  %vm595_vm6 = vc.u32 %v587_v40, %v591_v53 }
  0x93   : > { %v491_v62 = vshrl.u32 %v473_v49, %v489_v63  ;;  %v494_v41 = vadd.s32 127, %v493_v58  ;;  %v597_v57 = vadd.s32 %v591_v53, %v587_v40  ;;  %v596_v8 = vsel %vm595_vm6, 1, %v3069_v42  ;;  %v3496_v49 = vld.sshfl [vmem:[#allocation1 + $0x8] sm:$0xff pattern:$0x75316420] }
  0x94   : > { %v354_v60 = vadd.f32 0.041655596, %v353_v16  ;;  %v361_v25 = vadd.f32 0.008332121, %v360_v43  ;;  %vm1621_vm7 = vcmp.eq.s32.totalorder %v3450_v50, 2  ;;  %v598_v56 = vadd.s32 %v596_v8, %v590_v52 }
  0x95   : > { %v492_v5 = vor.u32 %v491_v62, %v490_v47  ;;  %v495_v44 = vshll.u32 %v494_v41, 23  ;;  %vm599_vm8 = vc.u32 %v597_v57, %v593_v15  ;;  %v613_v30 = vshll.u32 %v3488_v22, 16  ;;  %2741 = vst [vmem:[#allocation1] ss:$2 sm:$0xff] %v3177_v0 }
  0x96   : > { %v355_v33 = vmul.f32 %v354_v60, %v352_v39  ;;  %v362_v38 = vmul.f32 %v361_v25, %v352_v39  ;;  %vm374_vm9 = vcmp.eq.s32.totalorder %v3448_v35, 2  ;;  %v592_v43 = vshrl.u32 %v588_v4, 16  ;;  %v3512_v62 = vld.sshfl [vmem:[#allocation1 + $0x10] sm:$0xff pattern:$0x75316420] }
  0x97   : > { %v600_v63 = vsel %vm599_vm8, 1, %v3069_v42  ;;  %vm371_vm10 = vcmp.eq.s32.totalorder %v3448_v35, 0  ;;  %vm1618_vm11 = vcmp.eq.s32.totalorder %v3450_v50, 0  ;;  %vm3504_vm12 = vcmp.le.f32.partialorder %v379_v32, 0.7853982 }
  0x98   : > { %v356_v36 = vadd.f32 -0.4999988, %v355_v33  ;;  %v363_v16 = vadd.f32 -0.16666654, %v362_v38  ;;  %v496_v58 = vor.u32 4788187, %v495_v44  ;;  %v499_v52 = vcvt.s32.f32 %v492_v5 }
  0x99   : > { %v602_v53 = vadd.s32 %v600_v63, %v598_v56  ;;  %v612_v60 = vmul.u32 %v608_v11, %v584_v46  ;;  %vm370_vm13 = vcmp.lt.s32.totalorder %v3448_v35, 2  ;;  %vm1617_vm14 = vcmp.lt.s32.totalorder %v3450_v50, 2  ;;  %v3516_v0 = vld.sshfl [vmem:[#allocation1 + $0x18] sm:$0xff pattern:$0x75316420] }
  0x9a   : > { %v357_v25 = vmul.f32 %v356_v36, %v352_v39  ;;  %v364_v4 = vmul.f32 %v363_v16, %v352_v39  ;;  %v615_v47 = vshll.u32 %v3485_v17, 16  ;;  %vm617_vm15 = vc.u32 %v609_v9, %v613_v30  ;;  %2743 = vst [vmem:[#allocation1 + $0x10] ss:$2 sm:$0xff] %v3179_v1 }
  0x9b   : > { %vm367_vm2 = vweird.f32 %v3208_v27  ;;  %v497_v32 = vand.u32 2147483647, %v496_v58  ;;  %v603_v41 = vadd.s32 %v602_v53, %v592_v43  ;;  %v618_v15 = vsel %vm617_vm15, 1, %v3069_v42 }
  0x9c   : > { %v619_v46 = vadd.s32 %v613_v30, %v609_v9  ;;  %v358_v11 = vadd.f32 1.0, %v357_v25  ;;  %v365_v39 = vadd.f32 1.0, %v364_v4  ;;  %v504_v57 = vsel %vm381_vm5, %v503_v48, %v3421_v2 }
  0x9d   : > { %v620_v33 = vadd.s32 %v618_v15, %v612_v60  ;;  %v500_v38 = vmul.f32 %v499_v52, %v497_v32  ;;  %v573_v5 = vsel %vm567_vm3, %v3460_v26, %v3481_v54  ;;  %v594_v9 = vshrl.u32 %v3483_v34, 16 }
  0x9e   : > { %vm621_vm4 = vc.u32 %v619_v46, %v615_v47  ;;  %v366_v8 = vmul.f32 %v365_v39, %v3472_v31  ;;  %v375_v44 = vxor.u32 2147483648, %v358_v11  ;;  %v614_v56 = vshrl.u32 %v3488_v22, 16 }
  0x9f   : > { %v622_v30 = vsel %vm621_vm4, 1, %v3069_v42  ;;  %v501_v2 = vxor.u32 2147483648, %v500_v38  ;;  %v3533_v48 = vadd.s32 %v603_v41, %v594_v9  ;;  %v616_v1 = vshrl.u32 %v3485_v17, 16 }
  0xa0   : > { %v624_v36 = vadd.s32 %v622_v30, %v620_v33  ;;  %v372_v16 = vxor.u32 2147483648, %v366_v8  ;;  %v1623_v45 = vsel %vm1621_vm7, %v375_v44, %v366_v8  ;;  %v3538_v26 = vadd.s32 %v619_v46, %v615_v47 }
  0xa1   : > { %v170_v31 = vrot.slane %v3189_v13, 5  ;;  %v376_v54 = vsel %vm374_vm9, %v375_v44, %v366_v8  ;;  %v502_v34 = vsel %vm381_vm5, %v501_v2, %v500_v38  ;;  %v4341_v43 = vrot.slane %v3201_v24, 2 }
  0xa2   : > { %v625_v22 = vadd.s32 %v624_v36, %v614_v56  ;;  %v373_v17 = vsel %vm371_vm10, %v358_v11, %v372_v16  ;;  %v1620_v63 = vsel %vm1618_vm11, %v358_v11, %v372_v16  ;;  %v505_v58 = vsel %vm3504_vm12, %v3213_v28, %v502_v34 }
  0xa3   : > { %v213_v13 = vsel %vm209_vm0, %v3185_v7, %v170_v31  ;;  %v377_v52 = vsel %vm370_vm13, %v373_v17, %v376_v54  ;;  %v1624_v53 = vsel %vm1617_vm14, %v1620_v63, %v1623_v45  ;;  %v507_v60 = vmul.f32 %v505_v58, %v505_v58 }
  0xa4   : > { %v626_v25 = vadd.s32 %v625_v22, %v616_v1  ;;  %v378_v4 = vsel %vm367_vm2, nan, %v377_v52  ;;  %v3563_v47 = vsel %vm367_vm2, nan, %v1624_v53  ;;  %vm629_vm3 = vc.u32 %v3533_v48, %v3538_v26 }
  0xa5   : > { %v3570_v7 = vsel %vm214_vm1, %v213_v13, %v4341_v43  ;;  %1464 = vst [vmem:[%s3572_s23] sm:$0xff] %v378_v4  ;;  %v508_v35 = vmul.f32 -0.001358992, %v507_v60  ;;  %v515_v50 = vmul.f32 -0.00019511016, %v507_v60  ;;  %v506_v27 = vsel %vm3504_vm12, 0, %v504_v57 }
  0xa6   : > { %v630_v32 = vadd.s32 1, %v626_v25  ;;  %v627_v41 = vmul.u32 %v3429_v55, %v573_v5  ;;  %v692_v15 = vand.u32 2139095040, %v3570_v7  ;;  %v689_v33 = vand.u32 2147483647, %v3570_v7 }
  0xa7   : > { %v509_v46 = vadd.f32 0.041655596, %v508_v35  ;;  %v516_v11 = vadd.f32 0.008332121, %v515_v50  ;;  %v523_v56 = vadd.s32 3, %v506_v27  ;;  %v201_v5 = vrot.slane %v3492_v51, 7 }
  0xa8   : > { %v631_v39 = vsel %vm629_vm3, %v630_v32, %v626_v25  ;;  %v693_v9 = vshrl.u32 %v692_v15, 23  ;;  %v696_v40 = vand.u32 8388607, %v689_v33  ;;  %vm219_vm0 = vcmask 1040384  }
  0xa9   : > { %v632_v38 = vadd.s32 %v631_v39, %v627_v41  ;;  %v510_v8 = vmul.f32 %v509_v46, %v507_v60  ;;  %v517_v44 = vmul.f32 %v516_v11, %v507_v60  ;;  %v524_v31 = vand.u32 3, %v523_v56 }
  0xaa   : > { %v2863_v2 = vadd.s32 4294967169, %v693_v9  ;;  %v697_v17 = vor.u32 8388608, %v696_v40  ;;  %v3588_v53 = vsel %vm219_vm0, %v184_v20, %v201_v5  ;;  %vm522_vm5 = vweird.f32 %v3213_v28 }
  0xab   : > { %v633_v30 = vadd.s32 536870912, %v632_v38  ;;  %v511_v1 = vadd.f32 -0.4999988, %v510_v8  ;;  %v518_v36 = vadd.f32 -0.16666654, %v517_v44  ;;  %vm536_vm6 = vcmp.lt.s32.totalorder %v3226_v37, 0 }
  0xac   : > { %v699_v57 = vadd.s32 1, %v2863_v2  ;;  %vm526_vm8 = vcmp.eq.s32.totalorder %v524_v31, 0  ;;  %v3596_v35 = vshll.u32 %v697_v17, 8  ;;  %v847_v18 = vand.u32 2139095040, %v3588_v53 }
  0xad   : > { %v634_v55 = vshrl.u32 %v633_v30, 30  ;;  %v512_v16 = vmul.f32 %v511_v1, %v507_v60  ;;  %v519_v45 = vmul.f32 %v518_v36, %v507_v60  ;;  %vm529_vm9 = vcmp.eq.s32.totalorder %v524_v31, 2 }
  0xae   : > { %vm700_vm1 = vcmp.gt.s32.totalorder %v699_v57, 0  ;;  %vm525_vm10 = vcmp.lt.s32.totalorder %v524_v31, 2  ;;  %vm3609_vm11 = vcmp.le.f32.partialorder %v534_v12, 0.7853982  ;;  %v3613_v39 = vand.u32 3, %v506_v27 }
  0xaf   : > { %v635_v54 = vshll.u32 %v634_v55, 30  ;;  %v3583_v34 = vadd.f32 1.0, %v512_v16  ;;  %v520_v22 = vadd.f32 1.0, %v519_v45  ;;  %v701_v63 = vsel %vm700_vm1, %v699_v57, 0 }
  0xb0   : > { %v703_v52 = vand.u32 31, %v701_v63  ;;  %v844_v9 = vand.u32 2147483647, %v3588_v53  ;;  %v3621_v56 = vand.u32 65535, %v3596_v35  ;;  %v848_v12 = vshrl.u32 %v847_v18, 23 }
  0xb1   : > { %v636_v13 = vsub.s32 %v632_v38, %v635_v54  ;;  %v3590_v25 = vmul.f32 %v520_v22, %v505_v58  ;;  %v530_v51 = vxor.u32 2147483648, %v3583_v34  ;;  %v658_v58 = vsub.s32 4, %v634_v55 }
  0xb2   : > { %v3599_v50 = vsub.s32 32, %v703_v52  ;;  %v628_v38 = vadd.s32 %v3538_v26, %v3533_v48  ;;  %v3626_v2 = vshrl.u32 %v701_v63, 5  ;;  %v706_v27 = vshll.u32 %v3063_v59, %v703_v52 }
  0xb3   : > { %vm637_vm7 = vcmp.lt.s32.totalorder %v636_v13, 0  ;;  %v638_v60 = vsub.s32 0, %v636_v13  ;;  %v527_v4 = vxor.u32 2147483648, %v3590_v25  ;;  %v531_v41 = vsel %vm529_vm9, %v530_v51, %v3590_v25 }
  0xb4   : > { %v659_v30 = vsel %vm536_vm6, %v658_v58, %v634_v55  ;;  %v707_v48 = vshrl.u32 %v3064_v61, %v3599_v50  ;;  %v709_v26 = vshll.u32 %v3064_v61, %v703_v52  ;;  %v710_v1 = vshrl.u32 %v3065_v3, %v3599_v50 }
  0xb5   : > { %v639_v20 = vsel %vm637_vm7, %v638_v60, %v636_v13  ;;  %v528_v32 = vsel %vm526_vm8, %v3583_v34, %v527_v4  ;;  %v713_v36 = vshrl.u32 %v3066_v6, %v3599_v50  ;;  %v712_v57 = vshll.u32 %v3065_v3, %v703_v52 }
  0xb6   : > { %v640_v46 = vclz %v639_v20  ;;  %v532_v11 = vsel %vm525_vm10, %v528_v32, %v531_v41  ;;  %v715_v55 = vshll.u32 %v3066_v6, %v703_v52  ;;  %v716_v5 = vshrl.u32 %v3067_v10, %v3599_v50 }
  0xb7   : > { %v533_v8 = vsel %vm522_vm5, nan, %v532_v11  ;;  %v708_v31 = vor.u32 %v707_v48, %v706_v27  ;;  %v3640_v54 = vor.u32 %v710_v1, %v709_v26  ;;  %v714_v22 = vor.u32 %v713_v36, %v712_v57 }
  0xb8   : > { %v2861_v44 = vadd.s32 4294967294, %v640_v46  ;;  %1465 = vst [vmem:[%s3572_s23 + $0x8] sm:$0xff] %v533_v8  ;;  %v717_v17 = vor.u32 %v716_v5, %v715_v55  ;;  %v718_v63 = vshll.u32 %v3067_v10, %v703_v52  ;;  %v719_v60 = vshrl.u32 %v3068_v14, %v3599_v50 }
  0xb9   : > { %v739_v32 = vshrl.u32 %v3596_v35, 16  ;;  %v3648_v41 = vsel %vm3609_vm11, 0, %v659_v30  ;;  %vm721_vm13 = vcmp.lt.s32.totalorder %v3626_v2, 1  ;;  %v2866_v11 = vadd.s32 4294967169, %v848_v12 }
  0xba   : > { %vm2862_vm12 = vcmp.lt.s32.totalorder %v2861_v44, 0  ;;  %v720_v46 = vor.u32 %v719_v60, %v718_v63  ;;  %vm724_vm14 = vcmp.lt.s32.totalorder %v3626_v2, 4  ;;  %vm723_vm15 = vcmp.lt.s32.totalorder %v3626_v2, 3 }
  0xbb   : > { %v643_v40 = vsel %vm2862_vm12, 0, %v2861_v44  ;;  %v730_v52 = vsel %vm724_vm14, %v717_v17, 920167782  ;;  %v678_v27 = vadd.s32 3, %v3648_v41  ;;  %vm722_vm2 = vcmp.lt.s32.totalorder %v3626_v2, 2 }
  0xbc   : > { %v644_v16 = vsub.s32 32, %v643_v40  ;;  %v648_v45 = vsub.s32 4294967266, %v643_v40  ;;  %v645_v18 = vshll.u32 %v636_v13, %v643_v40  ;;  %v729_v13 = vsel %vm721_vm13, %v708_v31, %v3640_v54 }
  0xbd   : > { %v734_v12 = vsel %vm724_vm14, %v720_v46, 1326507024  ;;  %v731_v48 = vsel %vm723_vm15, %v714_v22, %v730_v52  ;;  %v854_v40 = vadd.s32 1, %v2866_v11  ;;  %vm1775_vm9 = vcmp.eq.s32.totalorder %v3613_v39, 2 }
  0xbe   : > { %v646_v20 = vshrl.u32 %v628_v38, %v644_v16  ;;  %v649_v58 = vadd.s32 127, %v648_v45  ;;  %v733_v38 = vsel %vm721_vm13, %v3640_v54, %v714_v22  ;;  %v732_v1 = vsel %vm722_vm2, %v729_v13, %v731_v48 }
  0xbf   : > { %v735_v36 = vsel %vm723_vm15, %v717_v17, %v734_v12  ;;  %v762_v5 = vand.u32 65535, %v732_v1  ;;  %v763_v16 = vshrl.u32 %v732_v1, 16  ;;  %v705_v45 = vshrl.u32 %v3063_v59, %v3599_v50 }
  0xc0   : > { %v647_v8 = vor.u32 %v646_v20, %v645_v18  ;;  %v650_v44 = vshll.u32 %v649_v58, 23  ;;  %v736_v55 = vsel %vm722_vm2, %v733_v38, %v735_v36  ;;  %v3677_v18 = vand.u32 8388607, %v844_v9 }
  0xc1   : > { %v740_v63 = vand.u32 65535, %v736_v55  ;;  %v741_v60 = vshrl.u32 %v736_v55, 16  ;;  %v3679_v58 = vand.u32 3, %v678_v27  ;;  %v765_v17 = vmul.u32 %v763_v16, %v3621_v56 }
  0xc2   : > { %v651_v30 = vor.u32 4788187, %v650_v44  ;;  %v654_v26 = vcvt.s32.f32 %v647_v8  ;;  %v766_v46 = vmul.u32 %v762_v5, %v739_v32  ;;  %v725_v11 = vsel %vm721_vm13, %v705_v45, %v708_v31 }
  0xc3   : > { %v726_v8 = vsel %vm724_vm14, %v714_v22, 2102212464  ;;  %v743_v50 = vmul.u32 %v741_v60, %v3621_v56  ;;  %v744_v44 = vmul.u32 %v740_v63, %v739_v32  ;;  %v764_v52 = vmul.u32 %v762_v5, %v3621_v56 }
  0xc4   : > { %v652_v57 = vand.u32 2147483647, %v651_v30  ;;  %v768_v38 = vshll.u32 %v765_v17, 16  ;;  %vm855_vm4 = vcmp.gt.s32.totalorder %v854_v40, 0  ;;  %v742_v12 = vmul.u32 %v740_v63, %v3621_v56 }
  0xc5   : > { %v745_v30 = vmul.u32 %v741_v60, %v739_v32  ;;  %v746_v27 = vshll.u32 %v743_v50, 16  ;;  %v767_v48 = vmul.u32 %v763_v16, %v739_v32  ;;  %v748_v31 = vshll.u32 %v744_v44, 16 }
  0xc6   : > { %v655_v20 = vmul.f32 %v654_v26, %v652_v57  ;;  %v770_v1 = vshll.u32 %v766_v46, 16  ;;  %vm772_vm3 = vc.u32 %v764_v52, %v768_v38  ;;  %v774_v55 = vadd.s32 %v768_v38, %v764_v52 }
  0xc7   : > { %vm750_vm1 = vc.u32 %v742_v12, %v746_v27  ;;  %v752_v36 = vadd.s32 %v746_v27, %v742_v12  ;;  %v773_v57 = vsel %vm772_vm3, 1, %v3069_v42  ;;  %v727_v16 = vsel %vm723_vm15, %v3640_v54, %v726_v8 }
  0xc8   : > { %v656_v13 = vxor.u32 2147483648, %v655_v20  ;;  %v751_v32 = vsel %vm750_vm1, 1, %v3069_v42  ;;  %v775_v5 = vadd.s32 %v773_v57, %v767_v48  ;;  %v856_v15 = vsel %vm855_vm4, %v854_v40, 0 }
  0xc9   : > { %v753_v45 = vadd.s32 %v751_v32, %v745_v30  ;;  %vm776_vm7 = vc.u32 %v774_v55, %v770_v1  ;;  %v769_v27 = vshrl.u32 %v765_v17, 16  ;;  %v858_v57 = vand.u32 31, %v856_v15 }
  0xca   : > { %v657_v26 = vsel %vm536_vm6, %v656_v13, %v655_v20  ;;  %vm754_vm6 = vc.u32 %v752_v36, %v748_v31  ;;  %v747_v13 = vshrl.u32 %v743_v50, 16  ;;  %v728_v54 = vsel %vm722_vm2, %v725_v11, %v727_v16 }
  0xcb   : > { %v3694_v22 = vsel %vm3609_vm11, %v3226_v37, %v657_v26  ;;  %v755_v20 = vsel %vm754_vm6, 1, %v3069_v42  ;;  %v777_v26 = vsel %vm776_vm7, 1, %v3069_v42  ;;  %v749_v8 = vshrl.u32 %v744_v44, 16 }
  0xcc   : > { %v662_v56 = vmul.f32 %v3694_v22, %v3694_v22  ;;  %v757_v12 = vadd.s32 %v755_v20, %v753_v45  ;;  %v779_v48 = vadd.s32 %v777_v26, %v775_v5  ;;  %v771_v40 = vshrl.u32 %v766_v46, 16 }
  0xcd   : > { %v3708_v43 = vsub.s32 32, %v858_v57  ;;  %v3712_v17 = vadd.s32 %v774_v55, %v770_v1  ;;  %v852_v45 = vor.u32 8388608, %v3677_v18  ;;  %v782_v11 = vmul.u32 %v3596_v35, %v728_v54 }
  0xce   : > { %v663_v63 = vmul.f32 -0.001358992, %v662_v56  ;;  %v670_v60 = vmul.f32 -0.00019511016, %v662_v56  ;;  %v758_v30 = vadd.s32 %v757_v12, %v747_v13  ;;  %v780_v32 = vadd.s32 %v779_v48, %v769_v27 }
  0xcf   : > { %v3721_v46 = vshrl.u32 %v856_v15, 5  ;;  %v865_v44 = vshrl.u32 %v3065_v3, %v3708_v43  ;;  %vm680_vm10 = vcmp.lt.s32.totalorder %v3679_v58, 2  ;;  %vm1772_vm11 = vcmp.eq.s32.totalorder %v3613_v39, 0 }
  0xd0   : > { %v664_v52 = vadd.f32 0.041655596, %v663_v63  ;;  %v671_v38 = vadd.f32 0.008332121, %v670_v60  ;;  %v3710_v50 = vadd.s32 %v758_v30, %v749_v8  ;;  %v3716_v60 = vand.u32 3, %v3648_v41 }
  0xd1   : > { %v781_v2 = vadd.s32 %v780_v32, %v771_v40  ;;  %v868_v41 = vshrl.u32 %v3066_v6, %v3708_v43  ;;  %vm677_vm12 = vweird.f32 %v3226_v37  ;;  %v862_v35 = vshrl.u32 %v3064_v61, %v3708_v43 }
  0xd2   : > { %v665_v31 = vmul.f32 %v664_v52, %v662_v56  ;;  %v672_v36 = vmul.f32 %v671_v38, %v662_v56  ;;  %vm784_vm8 = vc.u32 %v3710_v50, %v3712_v17  ;;  %v864_v16 = vshll.u32 %v3064_v61, %v858_v57 }
  0xd3   : > { %v785_v55 = vadd.s32 1, %v781_v2  ;;  %v867_v15 = vshll.u32 %v3065_v3, %v858_v57  ;;  %v870_v27 = vshll.u32 %v3066_v6, %v858_v57  ;;  %v873_v38 = vshll.u32 %v3067_v10, %v858_v57 }
  0xd4   : > { %v666_v63 = vadd.f32 -0.4999988, %v665_v31  ;;  %v673_v5 = vadd.f32 -0.16666654, %v672_v36  ;;  %v3743_v52 = vor.u32 %v865_v44, %v864_v16  ;;  %v874_v48 = vshrl.u32 %v3068_v14, %v3708_v43 }
  0xd5   : > { %v786_v12 = vsel %vm784_vm8, %v785_v55, %v781_v2  ;;  %vm1771_vm13 = vcmp.lt.s32.totalorder %v3613_v39, 2  ;;  %v3751_v30 = vor.u32 %v868_v41, %v867_v15  ;;  %vm681_vm14 = vcmp.eq.s32.totalorder %v3679_v58, 0 }
  0xd6   : > { %v667_v1 = vmul.f32 %v666_v63, %v662_v56  ;;  %v674_v18 = vmul.f32 %v673_v5, %v662_v56  ;;  %v871_v56 = vshrl.u32 %v3067_v10, %v3708_v43  ;;  %v787_v26 = vadd.s32 %v786_v12, %v782_v11 }
  0xd7   : > { %v861_v36 = vshll.u32 %v3063_v59, %v858_v57  ;;  %v875_v32 = vor.u32 %v874_v48, %v873_v38  ;;  %vm684_vm15 = vcmp.eq.s32.totalorder %v3679_v58, 2  ;;  %vm876_vm2 = vcmp.lt.s32.totalorder %v3721_v46, 1 }
  0xd8   : > { %v3737_v20 = vadd.f32 1.0, %v667_v1  ;;  %v675_v13 = vadd.f32 1.0, %v674_v18  ;;  %v872_v40 = vor.u32 %v871_v56, %v870_v27  ;;  %v788_v31 = vadd.s32 536870912, %v787_v26 }
  0xd9   : > { %v3757_v5 = vshll.u32 %v852_v45, 8  ;;  %v863_v11 = vor.u32 %v862_v35, %v861_v36  ;;  %vm879_vm4 = vcmp.lt.s32.totalorder %v3721_v46, 4  ;;  %v888_v1 = vsel %vm876_vm2, %v3743_v52, %v3751_v30 }
  0xda   : > { %v676_v54 = vmul.f32 %v675_v13, %v3694_v22  ;;  %v685_v8 = vxor.u32 2147483648, %v3737_v20  ;;  %v3759_v22 = vshrl.u32 %v788_v31, 30  ;;  %v885_v57 = vsel %vm879_vm4, %v872_v40, 920167782 }
  0xdb   : > { %v889_v45 = vsel %vm879_vm4, %v875_v32, 1326507024  ;;  %v1777_v18 = vsel %vm1775_vm9, %v530_v51, %v3590_v25  ;;  %vm878_vm3 = vcmp.lt.s32.totalorder %v3721_v46, 3  ;;  %v1774_v35 = vsel %vm1772_vm11, %v3583_v34, %v527_v4 }
  0xdc   : > { %v682_v63 = vxor.u32 2147483648, %v676_v54  ;;  %v686_v2 = vsel %vm684_vm15, %v685_v8, %v676_v54  ;;  %v790_v41 = vshll.u32 %v3759_v22, 30  ;;  %vm877_vm1 = vcmp.lt.s32.totalorder %v3721_v46, 2 }
  0xdd   : > { %v890_v51 = vsel %vm878_vm3, %v872_v40, %v889_v45  ;;  %v884_v15 = vsel %vm876_vm2, %v863_v11, %v3743_v52  ;;  %v886_v25 = vsel %vm878_vm3, %v3751_v30, %v885_v57  ;;  %v893_v4 = vand.u32 65535, %v3757_v5 }
  0xde   : > { %v683_v44 = vsel %vm681_vm14, %v3737_v20, %v682_v63  ;;  %v791_v58 = vsub.s32 %v787_v26, %v790_v41  ;;  %v891_v34 = vsel %vm877_vm1, %v888_v1, %v890_v51  ;;  %v894_v56 = vshrl.u32 %v3757_v5, 16 }
  0xdf   : > { %v687_v55 = vsel %vm680_vm10, %v683_v44, %v686_v2  ;;  %v895_v13 = vand.u32 65535, %v891_v34  ;;  %v896_v12 = vshrl.u32 %v891_v34, 16  ;;  %v1778_v27 = vsel %vm1771_vm13, %v1774_v35, %v1777_v18 }
  0xe0   : > { %v688_v16 = vsel %vm677_vm12, nan, %v687_v55  ;;  %vm792_vm6 = vcmp.lt.s32.totalorder %v791_v58, 0  ;;  %v793_v26 = vsub.s32 0, %v791_v58  ;;  %v887_v38 = vsel %vm877_vm1, %v884_v15, %v886_v25 }
  0xe1   : > { %1466 = vst [vmem:[%s3572_s23 + $0x10] sm:$0xff] %v688_v16  ;;  %v898_v48 = vmul.u32 %v896_v12, %v893_v4  ;;  %v3805_v40 = vmul.u32 %v895_v13, %v894_v56  ;;  %vm1925_vm7 = vcmp.lt.s32.totalorder %v3716_v60, 2  ;;  %vm1926_vm8 = vcmp.eq.s32.totalorder %v3716_v60, 0 }
  0xe2   : > { %vm1929_vm9 = vcmp.eq.s32.totalorder %v3716_v60, 2  ;;  %v794_v31 = vsel %vm792_vm6, %v793_v26, %v791_v58  ;;  %v3812_v36 = vsel %vm522_vm5, nan, %v1778_v27  ;;  %v897_v32 = vmul.u32 %v895_v13, %v893_v4 }
  0xe3   : > { %v795_v39 = vclz %v794_v31  ;;  %v901_v2 = vshll.u32 %v898_v48, 16  ;;  %v1928_v44 = vsel %vm1926_vm8, %v3737_v20, %v682_v63  ;;  %v860_v57 = vshrl.u32 %v3063_v59, %v3708_v43 }
  0xe4   : > { %v900_v1 = vmul.u32 %v896_v12, %v894_v56  ;;  %v917_v45 = vand.u32 65535, %v887_v38  ;;  %v903_v55 = vshll.u32 %v3805_v40, 16  ;;  %v1931_v35 = vsel %vm1929_vm9, %v685_v8, %v676_v54 }
  0xe5   : > { %v2864_v18 = vadd.s32 4294967294, %v795_v39  ;;  %vm905_vm10 = vc.u32 %v897_v32, %v901_v2  ;;  %v907_v41 = vadd.s32 %v901_v2, %v897_v32  ;;  %v783_v28 = vadd.s32 %v3712_v17, %v3710_v50 }
  0xe6   : > { %v906_v16 = vsel %vm905_vm10, 1, %v3069_v42  ;;  %v918_v51 = vshrl.u32 %v887_v38, 16  ;;  %v1932_v20 = vsel %vm1925_vm7, %v1928_v44, %v1931_v35  ;;  %v921_v34 = vmul.u32 %v917_v45, %v894_v56 }
  0xe7   : > { %vm2865_vm5 = vcmp.lt.s32.totalorder %v2864_v18, 0  ;;  %v908_v63 = vadd.s32 %v906_v16, %v900_v1  ;;  %vm909_vm11 = vc.u32 %v907_v41, %v903_v55  ;;  %v880_v54 = vsel %vm876_vm2, %v860_v57, %v863_v11 }
  0xe8   : > { %v798_v43 = vsel %vm2865_vm5, 0, %v2864_v18  ;;  %v910_v15 = vsel %vm909_vm11, 1, %v3069_v42  ;;  %v920_v25 = vmul.u32 %v918_v51, %v893_v4  ;;  %v3828_v17 = vsel %vm677_vm12, nan, %v1932_v20 }
  0xe9   : > { %v799_v13 = vsub.s32 32, %v798_v43  ;;  %v803_v12 = vsub.s32 4294967266, %v798_v43  ;;  %v912_v50 = vadd.s32 %v910_v15, %v908_v63  ;;  %vm691_vm13 = vcmp.lt.s32.totalorder %v3570_v7, 0 }
  0xea   : > { %v902_v60 = vshrl.u32 %v898_v48, 16  ;;  %v919_v8 = vmul.u32 %v917_v45, %v893_v4  ;;  %v923_v27 = vshll.u32 %v920_v25, 16  ;;  %v800_v26 = vshll.u32 %v791_v58, %v798_v43 }
  0xeb   : > { %v801_v38 = vshrl.u32 %v783_v28, %v799_v13  ;;  %v804_v31 = vadd.s32 127, %v803_v12  ;;  %v922_v39 = vmul.u32 %v918_v51, %v894_v56  ;;  %v925_v32 = vshll.u32 %v921_v34, 16 }
  0xec   : > { %vm927_vm14 = vc.u32 %v919_v8, %v923_v27  ;;  %v929_v2 = vadd.s32 %v923_v27, %v919_v8  ;;  %v202_v11 = vrot.slane %v3496_v49, 7  ;;  %v913_v37 = vadd.s32 %v912_v50, %v902_v60 }
  0xed   : > { %v802_v44 = vor.u32 %v801_v38, %v800_v26  ;;  %v805_v57 = vshll.u32 %v804_v31, 23  ;;  %v928_v1 = vsel %vm927_vm14, 1, %v3069_v42  ;;  %v2713_v48 = vrot.slane %v3563_v47, 4 }
  0xee   : > { %v2714_v4 = vrot.slane %v3812_v36, 4  ;;  %v2715_v58 = vrot.slane %v3828_v17, 4  ;;  %v930_v56 = vadd.s32 %v928_v1, %v922_v39  ;;  %v813_v18 = vsub.s32 4, %v3759_v22  ;;  %v2747_v36 = vld.sshfl [vmem:[#allocation1 + $0x18] sm:$0xff pattern:$0x75316420] }
  0xef   : > { %v806_v45 = vor.u32 4788187, %v805_v57  ;;  %v881_v49 = vsel %vm879_vm4, %v3751_v30, 2102212464  ;;  %vm931_vm12 = vc.u32 %v929_v2, %v925_v32  ;;  %2733 = vst [vmem:[%s3572_s23 + $0x20] sm:$0xf0] %v2713_v48  ;;  %v3848_v35 = vsel %vm219_vm0, %v185_v21, %v202_v11 }
  0xf0   : > { %v904_v55 = vshrl.u32 %v3805_v40, 16  ;;  %v932_v41 = vsel %vm931_vm12, 1, %v3069_v42  ;;  %v203_v28 = vrot.slane %v3512_v62, 7  ;;  %v809_v51 = vcvt.s32.f32 %v802_v44  ;;  %2734 = vst [vmem:[%s3572_s23 + $0x28] sm:$0xf0] %v2714_v4 }
  0xf1   : > { %v807_v16 = vand.u32 2147483647, %v806_v45  ;;  %v924_v30 = vshrl.u32 %v920_v25, 16  ;;  %v934_v20 = vadd.s32 %v932_v41, %v930_v56  ;;  %2735 = vst [vmem:[%s3572_s23 + $0x30] sm:$0xf0] %v2715_v58  ;;  %v882_v40 = vsel %vm878_vm3, %v3743_v52, %v881_v49 }
  0xf2   : > { %v914_v19 = vadd.s32 %v913_v37, %v904_v55  ;;  %v999_v21 = vand.u32 2147483647, %v3848_v35  ;;  %v1002_v63 = vand.u32 2139095040, %v3848_v35  ;;  %v814_v43 = vsel %vm691_vm13, %v813_v18, %v3759_v22  ;;  %2755 = vst [vmem:[%s3572_s23 + $0x78] sm:$0x7] %v2747_v36 }
  0xf3   : > { %v810_v62 = vmul.f32 %v809_v51, %v807_v16  ;;  %v926_v15 = vshrl.u32 %v921_v34, 16  ;;  %v935_v25 = vadd.s32 %v934_v20, %v924_v30  ;;  %v933_v13 = vadd.s32 %v929_v2, %v925_v32 }
  0xf4   : > { %v1003_v12 = vshrl.u32 %v1002_v63, 23  ;;  %v3868_v50 = vsel %vm219_vm0, %v186_v29, %v203_v28  ;;  %vm690_vm15 = vcmp.le.f32.partialorder %v689_v33, 0.7853982  ;;  %v883_v60 = vsel %vm877_vm1, %v880_v54, %v882_v40 }
  0xf5   : > { %v811_v52 = vxor.u32 2147483648, %v810_v62  ;;  %v936_v8 = vadd.s32 %v935_v25, %v926_v15  ;;  %v816_v27 = vsel %vm690_vm15, 0, %v814_v43  ;;  %vm939_vm2 = vc.u32 %v914_v19, %v933_v13 }
  0xf6   : > { %v2869_v22 = vadd.s32 4294967169, %v1003_v12  ;;  %v1006_v34 = vand.u32 8388607, %v999_v21  ;;  %v1157_v29 = vand.u32 2139095040, %v3868_v50  ;;  %v937_v33 = vmul.u32 %v3757_v5, %v883_v60 }
  0xf7   : > { %v812_v23 = vsel %vm691_vm13, %v811_v52, %v810_v62  ;;  %v940_v26 = vadd.s32 1, %v936_v8  ;;  %v833_v54 = vadd.s32 3, %v816_v27  ;;  %v1154_v11 = vand.u32 2147483647, %v3868_v50 }
  0xf8   : > { %v815_v38 = vsel %vm690_vm15, %v3570_v7, %v812_v23  ;;  %v1009_v31 = vadd.s32 1, %v2869_v22  ;;  %v1007_v2 = vor.u32 8388608, %v1006_v34  ;;  %v1158_v1 = vshrl.u32 %v1157_v29, 23 }
  0xf9   : > { %v817_v46 = vmul.f32 %v815_v38, %v815_v38  ;;  %v941_v39 = vsel %vm939_vm2, %v940_v26, %v936_v8  ;;  %v3882_v55 = vand.u32 3, %v833_v54  ;;  %v3884_v5 = vand.u32 3, %v816_v27 }
  0xfa   : > { %v942_v32 = vadd.s32 %v941_v39, %v937_v33  ;;  %vm1010_vm4 = vcmp.gt.s32.totalorder %v1009_v31, 0  ;;  %v3886_v28 = vshll.u32 %v1007_v2, 8  ;;  %v3890_v16 = vand.u32 8388607, %v1154_v11 }
  0xfb   : > { %v818_v44 = vmul.f32 -0.001358992, %v817_v46  ;;  %v825_v57 = vmul.f32 -0.00019511016, %v817_v46  ;;  %v1011_v37 = vsel %vm1010_vm4, %v1009_v31, 0  ;;  %v2872_v20 = vadd.s32 4294967169, %v1158_v1 }
  0xfc   : > { %v943_v56 = vadd.s32 536870912, %v942_v32  ;;  %v1013_v45 = vand.u32 31, %v1011_v37  ;;  %vm3894_vm3 = vcmp.le.f32.partialorder %v844_v9, 0.7853982  ;;  %vm846_vm1 = vcmp.lt.s32.totalorder %v3588_v53, 0 }
  0xfd   : > { %v819_v18 = vadd.f32 0.041655596, %v818_v44  ;;  %v826_v49 = vadd.f32 0.008332121, %v825_v57  ;;  %vm839_vm6 = vcmp.eq.s32.totalorder %v3882_v55, 2  ;;  %vm836_vm7 = vcmp.eq.s32.totalorder %v3882_v55, 0 }
  0xfe   : > { %v944_v41 = vshrl.u32 %v943_v56, 30  ;;  %v3899_v62 = vsub.s32 32, %v1013_v45  ;;  %vm2080_vm8 = vcmp.eq.s32.totalorder %v3884_v5, 0  ;;  %vm2083_vm9 = vcmp.eq.s32.totalorder %v3884_v5, 2 }
  0xff   : > { %v820_v51 = vmul.f32 %v819_v18, %v817_v46  ;;  %v827_v30 = vmul.f32 %v826_v49, %v817_v46  ;;  %v938_v9 = vadd.s32 %v933_v13, %v914_v19  ;;  %v3908_v52 = vand.u32 65535, %v3886_v28 }
 0x100   : > { %v945_v63 = vshll.u32 %v944_v41, 30  ;;  %v968_v25 = vsub.s32 4, %v944_v41  ;;  %v1162_v60 = vor.u32 8388608, %v3890_v16  ;;  %vm835_vm10 = vcmp.lt.s32.totalorder %v3882_v55, 2 }
 0x101   : > { %v821_v43 = vadd.f32 -0.4999988, %v820_v51  ;;  %v828_v15 = vadd.f32 -0.16666654, %v827_v30  ;;  %vm2079_vm5 = vcmp.lt.s32.totalorder %v3884_v5, 2  ;;  %v3914_v22 = vshrl.u32 %v3886_v28, 16 }
 0x102   : > { %v3905_v12 = vsub.s32 %v942_v32, %v945_v63  ;;  %v3916_v34 = vadd.s32 1, %v2872_v20  ;;  %vm832_vm11 = vweird.f32 %v3570_v7  ;;  %v1017_v13 = vshrl.u32 %v3064_v61, %v3899_v62 }
 0x103   : > { %v822_v8 = vmul.f32 %v821_v43, %v817_v46  ;;  %v829_v27 = vmul.f32 %v828_v15, %v817_v46  ;;  %v1020_v23 = vshrl.u32 %v3065_v3, %v3899_v62  ;;  %v969_v33 = vsel %vm846_vm1, %v968_v25, %v944_v41 }
 0x104   : > { %vm947_vm13 = vcmp.lt.s32.totalorder %v3905_v12, 0  ;;  %v948_v19 = vsub.s32 0, %v3905_v12  ;;  %v1023_v31 = vshrl.u32 %v3066_v6, %v3899_v62  ;;  %v1016_v54 = vshll.u32 %v3063_v59, %v1013_v45 }
 0x105   : > { %v823_v26 = vadd.f32 1.0, %v822_v8  ;;  %v830_v29 = vadd.f32 1.0, %v829_v27  ;;  %v1019_v39 = vshll.u32 %v3064_v61, %v1013_v45  ;;  %v1026_v32 = vshrl.u32 %v3067_v10, %v3899_v62 }
 0x106   : > { %v949_v46 = vsel %vm947_vm13, %v948_v19, %v3905_v12  ;;  %v1022_v1 = vshll.u32 %v3065_v3, %v1013_v45  ;;  %v971_v56 = vsel %vm3894_vm3, 0, %v969_v33  ;;  %v3937_v18 = vshrl.u32 %v1011_v37, 5 }
 0x107   : > { %v831_v2 = vmul.f32 %v830_v29, %v815_v38  ;;  %v840_v44 = vxor.u32 2147483648, %v823_v26  ;;  %v950_v57 = vclz %v949_v46  ;;  %v1018_v49 = vor.u32 %v1017_v13, %v1016_v54 }
 0x108   : > { %v1025_v41 = vshll.u32 %v3066_v6, %v1013_v45  ;;  %v1021_v20 = vor.u32 %v1020_v23, %v1019_v39  ;;  %v1024_v63 = vor.u32 %v1023_v31, %v1022_v1  ;;  %v1028_v15 = vshll.u32 %v3067_v10, %v1013_v45 }
 0x109   : > { %v837_v51 = vxor.u32 2147483648, %v831_v2  ;;  %v2867_v30 = vadd.s32 4294967294, %v950_v57  ;;  %v841_v43 = vsel %vm839_vm6, %v840_v44, %v831_v2  ;;  %v1029_v25 = vshrl.u32 %v3068_v14, %v3899_v62 }
 0x10a   : > { %v1027_v38 = vor.u32 %v1026_v32, %v1025_v41  ;;  %v2085_v27 = vsel %vm2083_vm9, %v840_v44, %v831_v2  ;;  %vm1031_vm12 = vcmp.lt.s32.totalorder %v3937_v18, 1  ;;  %vm1033_vm15 = vcmp.lt.s32.totalorder %v3937_v18, 3 }
 0x10b   : > { %v838_v37 = vsel %vm836_vm7, %v823_v26, %v837_v51  ;;  %v2082_v8 = vsel %vm2080_vm8, %v823_v26, %v837_v51  ;;  %vm2868_vm14 = vcmp.lt.s32.totalorder %v2867_v30, 0  ;;  %v1030_v33 = vor.u32 %v1029_v25, %v1028_v15 }
 0x10c   : > { %v842_v19 = vsel %vm835_vm10, %v838_v37, %v841_v43  ;;  %v2086_v13 = vsel %vm2079_vm5, %v2082_v8, %v2085_v27  ;;  %v953_v45 = vsel %vm2868_vm14, 0, %v2867_v30  ;;  %vm1034_vm2 = vcmp.lt.s32.totalorder %v3937_v18, 4 }
 0x10d   : > { %v843_v23 = vsel %vm832_vm11, nan, %v842_v19  ;;  %v3960_v26 = vsel %vm832_vm11, nan, %v2086_v13  ;;  %v954_v29 = vsub.s32 32, %v953_v45  ;;  %v958_v31 = vsub.s32 4294967266, %v953_v45 }
 0x10e   : > { %1467 = vst [vmem:[%s3572_s23 + $0x18] sm:$0xff] %v843_v23  ;;  %v2716_v55 = vrot.slane %v3960_v26, 4  ;;  %v955_v5 = vshll.u32 %v3905_v12, %v953_v45  ;;  %v1039_v54 = vsel %vm1031_vm12, %v1018_v49, %v1021_v20  ;;  %v1040_v39 = vsel %vm1034_vm2, %v1027_v38, 920167782 }
 0x10f   : > { %v956_v46 = vshrl.u32 %v938_v9, %v954_v29  ;;  %v959_v7 = vadd.s32 127, %v958_v31  ;;  %vm1032_vm4 = vcmp.lt.s32.totalorder %v3937_v18, 2  ;;  %v1041_v32 = vsel %vm1033_vm15, %v1024_v63, %v1040_v39 }
 0x110   : > { %2736 = vst [vmem:[%s3572_s23 + $0x38] sm:$0xf0] %v2716_v55  ;;  %v1043_v2 = vsel %vm1031_vm12, %v1021_v20, %v1024_v63  ;;  %v1036_v57 = vsel %vm1034_vm2, %v1024_v63, 2102212464  ;;  %v1042_v9 = vsel %vm1032_vm4, %v1039_v54, %v1041_v32  ;;  %v1044_v12 = vsel %vm1034_vm2, %v1030_v33, 1326507024 }
 0x111   : > { %v957_v44 = vor.u32 %v956_v46, %v955_v5  ;;  %v960_v1 = vshll.u32 %v959_v7, 23  ;;  %v1045_v41 = vsel %vm1033_vm15, %v1027_v38, %v1044_v12  ;;  %v1072_v51 = vand.u32 65535, %v1042_v9 }
 0x112   : > { %v1073_v30 = vshrl.u32 %v1042_v9, 16  ;;  %v988_v43 = vadd.s32 3, %v971_v56  ;;  %v1015_v15 = vshrl.u32 %v3063_v59, %v3899_v62  ;;  %v1046_v25 = vsel %vm1032_vm4, %v1043_v2, %v1045_v41 }
 0x113   : > { %vm1165_vm6 = vcmp.gt.s32.totalorder %v3916_v34, 0  ;;  %v961_v63 = vor.u32 4788187, %v960_v1  ;;  %v3986_v37 = vand.u32 3, %v971_v56  ;;  %v1050_v8 = vand.u32 65535, %v1046_v25 }
 0x114   : > { %v1051_v27 = vshrl.u32 %v1046_v25, 16  ;;  %v1035_v19 = vsel %vm1031_vm12, %v1015_v15, %v1018_v49  ;;  %v1037_v38 = vsel %vm1033_vm15, %v1021_v20, %v1036_v57  ;;  %v1075_v13 = vmul.u32 %v1073_v30, %v3908_v52 }
 0x115   : > { %v1076_v62 = vmul.u32 %v1072_v51, %v3914_v22  ;;  %v962_v45 = vand.u32 2147483647, %v961_v63  ;;  %v964_v23 = vcvt.s32.f32 %v957_v44  ;;  %v1054_v33 = vmul.u32 %v1050_v8, %v3914_v22 }
 0x116   : > { %v1053_v29 = vmul.u32 %v1051_v27, %v3908_v52  ;;  %v1074_v56 = vmul.u32 %v1072_v51, %v3908_v52  ;;  %v1077_v31 = vmul.u32 %v1073_v30, %v3914_v22  ;;  %v1078_v5 = vshll.u32 %v1075_v13, 16 }
 0x117   : > { %v1166_v49 = vsel %vm1165_vm6, %v3916_v34, 0  ;;  %v965_v20 = vmul.f32 %v964_v23, %v962_v45  ;;  %v1052_v46 = vmul.u32 %v1050_v8, %v3908_v52  ;;  %v1055_v54 = vmul.u32 %v1051_v27, %v3914_v22 }
 0x118   : > { %v1056_v39 = vshll.u32 %v1053_v29, 16  ;;  %v1058_v7 = vshll.u32 %v1054_v33, 16  ;;  %v1080_v32 = vshll.u32 %v1076_v62, 16  ;;  %vm1082_vm7 = vc.u32 %v1074_v56, %v1078_v5 }
 0x119   : > { %v1084_v2 = vadd.s32 %v1078_v5, %v1074_v56  ;;  %v966_v44 = vxor.u32 2147483648, %v965_v20  ;;  %v1083_v9 = vsel %vm1082_vm7, 1, %v3069_v42  ;;  %v1079_v1 = vshrl.u32 %v1075_v13, 16 }
 0x11a   : > { %vm1060_vm8 = vc.u32 %v1052_v46, %v1056_v39  ;;  %v1062_v57 = vadd.s32 %v1056_v39, %v1052_v46  ;;  %v1085_v41 = vadd.s32 %v1083_v9, %v1077_v31  ;;  %v1168_v25 = vand.u32 31, %v1166_v49 }
 0x11b   : > { %v1061_v12 = vsel %vm1060_vm8, 1, %v3069_v42  ;;  %vm1086_vm9 = vc.u32 %v1084_v2, %v1080_v32  ;;  %v967_v52 = vsel %vm846_vm1, %v966_v44, %v965_v20  ;;  %v1038_v8 = vsel %vm1032_vm4, %v1035_v19, %v1037_v38 }
 0x11c   : > { %v1063_v34 = vadd.s32 %v1061_v12, %v1055_v54  ;;  %vm1064_vm10 = vc.u32 %v1062_v57, %v1058_v7  ;;  %v1087_v22 = vsel %vm1086_vm9, 1, %v3069_v42  ;;  %v970_v51 = vsel %vm3894_vm3, %v3588_v53, %v967_v52 }
 0x11d   : > { %v1065_v30 = vsel %vm1064_vm10, 1, %v3069_v42  ;;  %v1089_v15 = vadd.s32 %v1087_v22, %v1085_v41  ;;  %v972_v63 = vmul.f32 %v970_v51, %v970_v51  ;;  %v1057_v27 = vshrl.u32 %v1053_v29, 16 }
 0x11e   : > { %v1067_v13 = vadd.s32 %v1065_v30, %v1063_v34  ;;  %v4014_v45 = vand.u32 3, %v988_v43  ;;  %v1081_v23 = vshrl.u32 %v1076_v62, 16  ;;  %v4016_v31 = vsub.s32 32, %v1168_v25 }
 0x11f   : > { %v1090_v56 = vadd.s32 %v1089_v15, %v1079_v1  ;;  %v973_v5 = vmul.f32 -0.001358992, %v972_v63  ;;  %v980_v20 = vmul.f32 -0.00019511016, %v972_v63  ;;  %v1059_v40 = vshrl.u32 %v1054_v33, 16 }
 0x120   : > { %v1068_v46 = vadd.s32 %v1067_v13, %v1057_v27  ;;  %v4018_v54 = vadd.s32 %v1084_v2, %v1080_v32  ;;  %v1092_v7 = vmul.u32 %v3886_v28, %v1038_v8  ;;  %v4021_v44 = vshrl.u32 %v1166_v49, 5 }
 0x121   : > { %v1091_v39 = vadd.s32 %v1090_v56, %v1081_v23  ;;  %v974_v18 = vadd.f32 0.041655596, %v973_v5  ;;  %v981_v19 = vadd.f32 0.008332121, %v980_v20  ;;  %v1174_v43 = vshll.u32 %v3064_v61, %v1168_v25 }
 0x122   : > { %v4023_v38 = vadd.s32 %v1068_v46, %v1059_v40  ;;  %v1175_v29 = vshrl.u32 %v3065_v3, %v4016_v31  ;;  %v1177_v33 = vshll.u32 %v3065_v3, %v1168_v25  ;;  %v1178_v32 = vshrl.u32 %v3066_v6, %v4016_v31 }
 0x123   : > { %v1095_v62 = vadd.s32 1, %v1091_v39  ;;  %v975_v2 = vmul.f32 %v974_v18, %v972_v63  ;;  %v982_v57 = vmul.f32 %v981_v19, %v972_v63  ;;  %v1172_v28 = vshrl.u32 %v3064_v61, %v4016_v31 }
 0x124   : > { %vm1094_vm3 = vc.u32 %v4023_v38, %v4018_v54  ;;  %v1180_v9 = vshll.u32 %v3066_v6, %v1168_v25  ;;  %v1181_v12 = vshrl.u32 %v3067_v10, %v4016_v31  ;;  %v1183_v1 = vshll.u32 %v3067_v10, %v1168_v25 }
 0x125   : > { %v1096_v49 = vsel %vm1094_vm3, %v1095_v62, %v1091_v39  ;;  %v976_v41 = vadd.f32 -0.4999988, %v975_v2  ;;  %v983_v52 = vadd.f32 -0.16666654, %v982_v57  ;;  %v1184_v22 = vshrl.u32 %v3068_v14, %v4016_v31 }
 0x126   : > { %v1097_v34 = vadd.s32 %v1096_v49, %v1092_v7  ;;  %v1171_v30 = vshll.u32 %v3063_v59, %v1168_v25  ;;  %v4042_v15 = vor.u32 %v1175_v29, %v1174_v43  ;;  %v4044_v8 = vor.u32 %v1178_v32, %v1177_v33 }
 0x127   : > { %v1182_v27 = vor.u32 %v1181_v12, %v1180_v9  ;;  %v977_v13 = vmul.f32 %v976_v41, %v972_v63  ;;  %v984_v23 = vmul.f32 %v983_v52, %v972_v63  ;;  %vm2233_vm1 = vcmp.lt.s32.totalorder %v3986_v37, 2 }
 0x128   : > { %v1098_v56 = vadd.s32 536870912, %v1097_v34  ;;  %v1185_v5 = vor.u32 %v1184_v22, %v1183_v1  ;;  %vm987_vm5 = vweird.f32 %v3588_v53  ;;  %vm990_vm11 = vcmp.lt.s32.totalorder %v4014_v45, 2 }
 0x129   : > { %vm2234_vm13 = vcmp.eq.s32.totalorder %v3986_v37, 0  ;;  %vm2237_vm14 = vcmp.eq.s32.totalorder %v3986_v37, 2  ;;  %v4051_v25 = vor.u32 %v1172_v28, %v1171_v30  ;;  %v978_v20 = vadd.f32 1.0, %v977_v13 }
 0x12a   : > { %v985_v40 = vadd.f32 1.0, %v984_v23  ;;  %v4053_v46 = vshrl.u32 %v1098_v56, 30  ;;  %vm1189_vm12 = vcmp.lt.s32.totalorder %v4021_v44, 4  ;;  %vm1186_vm15 = vcmp.lt.s32.totalorder %v4021_v44, 1 }
 0x12b   : > { %vm1188_vm2 = vcmp.lt.s32.totalorder %v4021_v44, 3  ;;  %v1195_v63 = vsel %vm1189_vm12, %v1182_v27, 920167782  ;;  %v1199_v39 = vsel %vm1189_vm12, %v1185_v5, 1326507024  ;;  %v995_v18 = vxor.u32 2147483648, %v978_v20 }
 0x12c   : > { %v986_v7 = vmul.f32 %v985_v40, %v970_v51  ;;  %v1100_v19 = vshll.u32 %v4053_v46, 30  ;;  %v1198_v43 = vsel %vm1186_vm15, %v4042_v15, %v4044_v8  ;;  %vm994_vm4 = vcmp.eq.s32.totalorder %v4014_v45, 2 }
 0x12d   : > { %vm1187_vm6 = vcmp.lt.s32.totalorder %v4021_v44, 2  ;;  %v1194_v62 = vsel %vm1186_vm15, %v4051_v25, %v4042_v15  ;;  %v1200_v51 = vsel %vm1188_vm2, %v1182_v27, %v1199_v39  ;;  %v1196_v2 = vsel %vm1188_vm2, %v4044_v8, %v1195_v63 }
 0x12e   : > { %v992_v29 = vxor.u32 2147483648, %v986_v7  ;;  %v2239_v33 = vsel %vm2237_vm14, %v995_v18, %v986_v7  ;;  %v1101_v32 = vsub.s32 %v1097_v34, %v1100_v19  ;;  %vm991_vm7 = vcmp.eq.s32.totalorder %v4014_v45, 0 }
 0x12f   : > { %v996_v57 = vsel %vm994_vm4, %v995_v18, %v986_v7  ;;  %v1201_v28 = vsel %vm1187_vm6, %v1198_v43, %v1200_v51  ;;  %v4085_v49 = vshll.u32 %v1162_v60, 8  ;;  %v1197_v34 = vsel %vm1187_vm6, %v1194_v62, %v1196_v2 }
 0x130   : > { %v993_v9 = vsel %vm991_vm7, %v978_v20, %v992_v29  ;;  %v2236_v12 = vsel %vm2234_vm13, %v978_v20, %v992_v29  ;;  %vm1102_vm8 = vcmp.lt.s32.totalorder %v1101_v32, 0  ;;  %v1103_v1 = vsub.s32 0, %v1101_v32 }
 0x131   : > { %v997_v41 = vsel %vm990_vm11, %v993_v9, %v996_v57  ;;  %v2240_v52 = vsel %vm2233_vm1, %v2236_v12, %v2239_v33  ;;  %v1205_v22 = vand.u32 65535, %v1201_v28  ;;  %v1204_v45 = vshrl.u32 %v4085_v49, 16 }
 0x132   : > { %v998_v16 = vsel %vm987_vm5, nan, %v997_v41  ;;  %v4099_v60 = vsel %vm987_vm5, nan, %v2240_v52  ;;  %v1104_v30 = vsel %vm1102_vm8, %v1103_v1, %v1101_v32  ;;  %v1206_v13 = vshrl.u32 %v1201_v28, 16 }
 0x133   : > { %1468 = vst [vmem:[%s3572_s23 + $0x20] sm:$0xf] %v998_v16  ;;  %v1105_v27 = vclz %v1104_v30  ;;  %v1203_v37 = vand.u32 65535, %v4085_v49  ;;  %v1227_v23 = vand.u32 65535, %v1197_v34  ;;  %v1228_v56 = vshrl.u32 %v1197_v34, 16 }
 0x134   : > { %v1209_v20 = vmul.u32 %v1205_v22, %v1204_v45  ;;  %v1093_v63 = vadd.s32 %v4018_v54, %v4023_v38  ;;  %v1210_v51 = vmul.u32 %v1206_v13, %v1204_v45  ;;  %vm1000_vm11 = vcmp.le.f32.partialorder %v999_v21, 0.7853982 }
 0x135   : > { %v2870_v5 = vadd.s32 4294967294, %v1105_v27  ;;  %v1208_v40 = vmul.u32 %v1206_v13, %v1203_v37  ;;  %v1207_v53 = vmul.u32 %v1205_v22, %v1203_v37  ;;  %v1229_v18 = vmul.u32 %v1227_v23, %v1203_v37 }
 0x136   : > { %v1230_v19 = vmul.u32 %v1228_v56, %v1203_v37  ;;  %v1213_v29 = vshll.u32 %v1209_v20, 16  ;;  %v1231_v2 = vmul.u32 %v1227_v23, %v1204_v45  ;;  %v1232_v41 = vmul.u32 %v1228_v56, %v1204_v45 }
 0x137   : > { %vm2871_vm9 = vcmp.lt.s32.totalorder %v2870_v5, 0  ;;  %v1211_v7 = vshll.u32 %v1208_v40, 16  ;;  %v1212_v54 = vshrl.u32 %v1208_v40, 16  ;;  %v1191_v45 = vsel %vm1189_vm12, %v4044_v8, 2102212464 }
 0x138   : > { %v1108_v39 = vsel %vm2871_vm9, 0, %v2870_v5  ;;  %v1233_v57 = vshll.u32 %v1230_v19, 16  ;;  %v1235_v30 = vshll.u32 %v1231_v2, 16  ;;  %v204_v5 = vrot.slane %v3516_v0, 7 }
 0x139   : > { %v1109_v43 = vsub.s32 32, %v1108_v39  ;;  %v1113_v62 = vsub.s32 4294967266, %v1108_v39  ;;  %vm1215_vm10 = vc.u32 %v1207_v53, %v1211_v7  ;;  %v1217_v33 = vadd.s32 %v1211_v7, %v1207_v53 }
 0x13a   : > { %v1110_v28 = vshll.u32 %v1101_v32, %v1108_v39  ;;  %v1216_v1 = vsel %vm1215_vm10, 1, %v3069_v42  ;;  %vm1237_vm1 = vc.u32 %v1229_v18, %v1233_v57  ;;  %v1239_v13 = vadd.s32 %v1233_v57, %v1229_v18 }
 0x13b   : > { %v1111_v9 = vshrl.u32 %v1093_v63, %v1109_v43  ;;  %v1114_v12 = vadd.s32 127, %v1113_v62  ;;  %v1218_v38 = vadd.s32 %v1216_v1, %v1210_v51  ;;  %vm1219_vm3 = vc.u32 %v1217_v33, %v1213_v29 }
 0x13c   : > { %v1220_v22 = vsel %vm1219_vm3, 1, %v3069_v42  ;;  %v1238_v27 = vsel %vm1237_vm1, 1, %v3069_v42  ;;  %v1170_v32 = vshrl.u32 %v3063_v59, %v4016_v31  ;;  %v1214_v56 = vshrl.u32 %v1209_v20, 16 }
 0x13d   : > { %v1112_v52 = vor.u32 %v1111_v9, %v1110_v28  ;;  %v1115_v34 = vshll.u32 %v1114_v12, 23  ;;  %v1222_v16 = vadd.s32 %v1220_v22, %v1218_v38  ;;  %v1240_v23 = vadd.s32 %v1238_v27, %v1232_v41 }
 0x13e   : > { %vm1241_vm5 = vc.u32 %v1239_v13, %v1235_v30  ;;  %v4355_v7 = vrot.slane %v3201_v24, 2  ;;  %v1123_v31 = vsub.s32 4, %v4053_v46  ;;  %v1190_v0 = vsel %vm1186_vm15, %v1170_v32, %v4051_v25 }
 0x13f   : > { %v1116_v37 = vor.u32 4788187, %v1115_v34  ;;  %v1223_v40 = vadd.s32 %v1222_v16, %v1212_v54  ;;  %v1119_v53 = vcvt.s32.f32 %v1112_v52  ;;  %v1242_v39 = vsel %vm1241_vm5, 1, %v3069_v42 }
 0x140   : > { %v4119_v18 = vsel %vm219_vm0, %v4355_v7, %v204_v5  ;;  %v1234_v43 = vshrl.u32 %v1230_v19, 16  ;;  %v1244_v8 = vadd.s32 %v1242_v39, %v1240_v23  ;;  %v1192_v62 = vsel %vm1188_vm2, %v4042_v15, %v1191_v45 }
 0x141   : > { %v1117_v63 = vand.u32 2147483647, %v1116_v37  ;;  %v4128_v51 = vadd.s32 %v1223_v40, %v1214_v56  ;;  %v1312_v24 = vand.u32 2139095040, %v4119_v18  ;;  %v1236_v29 = vshrl.u32 %v1231_v2, 16 }
 0x142   : > { %v1245_v33 = vadd.s32 %v1244_v8, %v1234_v43  ;;  %vm1001_vm0 = vcmp.lt.s32.totalorder %v3848_v35, 0  ;;  %v4132_v28 = vadd.s32 %v1239_v13, %v1235_v30  ;;  %v1193_v19 = vsel %vm1187_vm6, %v1190_v0, %v1192_v62 }
 0x143   : > { %v1120_v20 = vmul.f32 %v1119_v53, %v1117_v63  ;;  %v1313_v9 = vshrl.u32 %v1312_v24, 23  ;;  %v1124_v25 = vsel %vm1001_vm0, %v1123_v31, %v4053_v46  ;;  %v1247_v46 = vmul.u32 %v4085_v49, %v1193_v19 }
 0x144   : > { %v1246_v12 = vadd.s32 %v1245_v33, %v1236_v29  ;;  %vm1249_vm13 = vc.u32 %v4128_v51, %v4132_v28  ;;  %v4142_v38 = vsel %vm1000_vm11, 0, %v1124_v25  ;;  %v1309_v56 = vand.u32 2147483647, %v4119_v18 }
 0x145   : > { %v1121_v57 = vxor.u32 2147483648, %v1120_v20  ;;  %v2875_v2 = vadd.s32 4294967169, %v1313_v9  ;;  %v1143_v21 = vadd.s32 3, %v4142_v38  ;;  %vm1142_vm6 = vweird.f32 %v3848_v35 }
 0x146   : > { %v1250_v54 = vadd.s32 1, %v1246_v12  ;;  %v1316_v43 = vand.u32 8388607, %v1309_v56  ;;  %vm1156_vm1 = vcmp.lt.s32.totalorder %v3868_v50, 0  ;;  %vm4226_vm5 = vcmp.le.f32.partialorder %v1154_v11, 0.7853982 }
 0x147   : > { %v1122_v15 = vsel %vm1001_vm0, %v1121_v57, %v1120_v20  ;;  %v1319_v52 = vadd.s32 1, %v2875_v2  ;;  %v1144_v49 = vand.u32 3, %v1143_v21 }
 0x148   : > { %v1125_v1 = vsel %vm1000_vm11, %v3848_v35, %v1122_v15  ;;  %v1251_v44 = vsel %vm1249_vm13, %v1250_v54, %v1246_v12  ;;  %v1317_v25 = vor.u32 8388608, %v1316_v43 }
 0x149   : > { %v1127_v41 = vmul.f32 %v1125_v1, %v1125_v1  ;;  %v1252_v16 = vadd.s32 %v1251_v44, %v1247_v46  ;;  %vm1320_vm14 = vcmp.gt.s32.totalorder %v1319_v52, 0  ;;  %vm1145_vm12 = vcmp.lt.s32.totalorder %v1144_v49, 2 }
 0x14a   : > { %v1321_v30 = vsel %vm1320_vm14, %v1319_v52, 0  ;;  %vm1146_vm2 = vcmp.eq.s32.totalorder %v1144_v49, 0  ;;  %vm1149_vm4 = vcmp.eq.s32.totalorder %v1144_v49, 2 }
 0x14b   : > { %v1128_v34 = vmul.f32 -0.001358992, %v1127_v41  ;;  %v1135_v22 = vmul.f32 -0.00019511016, %v1127_v41  ;;  %v1253_v37 = vadd.s32 536870912, %v1252_v16  ;;  %v1323_v32 = vand.u32 31, %v1321_v30 }
 0x14d   : > { %v1129_v27 = vadd.f32 0.041655596, %v1128_v34  ;;  %v1136_v13 = vadd.f32 0.008332121, %v1135_v22  ;;  %v4146_v45 = vshrl.u32 %v1253_v37, 30  ;;  %v4150_v39 = vsub.s32 32, %v1323_v32 }
 0x14e   : > { %v1326_v12 = vshll.u32 %v3063_v59, %v1323_v32  ;;  %v1329_v15 = vshll.u32 %v3064_v61, %v1323_v32  ;;  %v1332_v46 = vshll.u32 %v3065_v3, %v1323_v32 }
 0x14f   : > { %v1130_v23 = vmul.f32 %v1129_v27, %v1127_v41  ;;  %v1137_v5 = vmul.f32 %v1136_v13, %v1127_v41  ;;  %v1255_v53 = vshll.u32 %v4146_v45, 30  ;;  %v1327_v24 = vshrl.u32 %v3064_v61, %v4150_v39 }
 0x150   : > { %v1330_v29 = vshrl.u32 %v3065_v3, %v4150_v39  ;;  %v1336_v2 = vshrl.u32 %v3067_v10, %v4150_v39  ;;  %v1335_v61 = vshll.u32 %v3066_v6, %v1323_v32  ;;  %v1339_v21 = vshrl.u32 %v3068_v14, %v4150_v39 }
 0x151   : > { %v1131_v40 = vadd.f32 -0.4999988, %v1130_v23  ;;  %v1138_v63 = vadd.f32 -0.16666654, %v1137_v5  ;;  %v1256_v0 = vsub.s32 %v1252_v16, %v1255_v53  ;;  %v4173_v44 = vor.u32 %v1327_v24, %v1326_v12 }
 0x152   : > { %v4175_v34 = vor.u32 %v1330_v29, %v1329_v15  ;;  %v1338_v16 = vshll.u32 %v3067_v10, %v1323_v32  ;;  %v1248_v5 = vadd.s32 %v4132_v28, %v4128_v51 }
 0x153   : > { %v1132_v7 = vmul.f32 %v1131_v40, %v1127_v41  ;;  %v1139_v31 = vmul.f32 %v1138_v63, %v1127_v41  ;;  %vm1257_vm15 = vcmp.lt.s32.totalorder %v1256_v0, 0  ;;  %v1258_v62 = vsub.s32 0, %v1256_v0 }
 0x154   : > { %v4168_v41 = vshrl.u32 %v1321_v30, 5  ;;  %v1340_v23 = vor.u32 %v1339_v21, %v1338_v16  ;;  %v4202_v40 = vshll.u32 %v1317_v25, 8  ;;  %v1325_v16 = vshrl.u32 %v3063_v59, %v4150_v39 }
 0x155   : > { %v4154_v8 = vadd.f32 1.0, %v1132_v7  ;;  %v1140_v20 = vadd.f32 1.0, %v1139_v31  ;;  %v1259_v9 = vsel %vm1257_vm15, %v1258_v62, %v1256_v0 }
 0x156   : > { %v1260_v19 = vclz %v1259_v9  ;;  %vm1341_vm8 = vcmp.lt.s32.totalorder %v4168_v41, 1  ;;  %vm1344_vm9 = vcmp.lt.s32.totalorder %v4168_v41, 4  ;;  %vm1343_vm10 = vcmp.lt.s32.totalorder %v4168_v41, 3 }
 0x157   : > { %v4160_v33 = vmul.f32 %v1140_v20, %v1125_v1  ;;  %v1150_v57 = vxor.u32 2147483648, %v4154_v8  ;;  %v1333_v1 = vshrl.u32 %v3066_v6, %v4150_v39  ;;  %v1337_v6 = vor.u32 %v1336_v2, %v1335_v61 }
 0x158   : > { %v2873_v52 = vadd.s32 4294967294, %v1260_v19  ;;  %v1349_v49 = vsel %vm1341_vm8, %v4173_v44, %v4175_v34  ;;  %vm1342_vm3 = vcmp.lt.s32.totalorder %v4168_v41, 2  ;;  %v1354_v31 = vsel %vm1344_vm9, %v1340_v23, 1326507024 }
 0x159   : > { %v1147_v54 = vxor.u32 2147483648, %v4160_v33  ;;  %v1151_v3 = vsel %vm1149_vm4, %v1150_v57, %v4160_v33  ;;  %v1334_v37 = vor.u32 %v1333_v1, %v1332_v46  ;;  %v1350_v51 = vsel %vm1344_vm9, %v1337_v6, 920167782 }
 0x15a   : > { %vm2874_vm7 = vcmp.lt.s32.totalorder %v2873_v52, 0  ;;  %v1355_v62 = vsel %vm1343_vm10, %v1337_v6, %v1354_v31  ;;  %v1358_v24 = vand.u32 65535, %v4202_v40  ;;  %v1359_v12 = vshrl.u32 %v4202_v40, 16 }
 0x15b   : > { %v1148_v22 = vsel %vm1146_vm2, %v4154_v8, %v1147_v54  ;;  %v1263_v13 = vsel %vm2874_vm7, 0, %v2873_v52  ;;  %v1351_v28 = vsel %vm1343_vm10, %v1334_v37, %v1350_v51  ;;  %v1353_v7 = vsel %vm1341_vm8, %v4175_v34, %v1334_v37 }
 0x15c   : > { %v1152_v30 = vsel %vm1145_vm12, %v1148_v22, %v1151_v3  ;;  %v1264_v10 = vsub.s32 32, %v1263_v13  ;;  %v1268_v32 = vsub.s32 4294967266, %v1263_v13  ;;  %v1265_v14 = vshll.u32 %v1256_v0, %v1263_v13 }
 0x15d   : > { %v1153_v27 = vsel %vm1142_vm6, nan, %v1152_v30  ;;  %v1352_v20 = vsel %vm1342_vm3, %v1349_v49, %v1351_v28  ;;  %v1356_v19 = vsel %vm1342_vm3, %v1353_v7, %v1355_v62  ;;  %v1278_v3 = vsub.s32 4, %v4146_v45 }
 0x15e   : > { %1469 = vst [vmem:[%s3572_s23 + $0x28] sm:$0xf] %v1153_v27  ;;  %v1266_v63 = vshrl.u32 %v1248_v5, %v1264_v10  ;;  %v1269_v53 = vadd.s32 127, %v1268_v32  ;;  %v1382_v29 = vand.u32 65535, %v1352_v20  ;;  %v1383_v9 = vshrl.u32 %v1352_v20, 16 }
 0x15f   : > { %v1360_v15 = vand.u32 65535, %v1356_v19  ;;  %v1361_v2 = vshrl.u32 %v1356_v19, 16  ;;  %v1346_v27 = vsel %vm1344_vm9, %v1334_v37, 2102212464  ;;  %vm1297_vm7 = vweird.f32 %v3868_v50 }
 0x160   : > { %v1267_v0 = vor.u32 %v1266_v63, %v1265_v14  ;;  %v1270_v43 = vshll.u32 %v1269_v53, 23  ;;  %v1385_v46 = vmul.u32 %v1383_v9, %v1358_v24  ;;  %v1386_v22 = vmul.u32 %v1382_v29, %v1359_v12 }
 0x161   : > { %v1363_v21 = vmul.u32 %v1361_v2, %v1358_v24  ;;  %v1364_v30 = vmul.u32 %v1360_v15, %v1359_v12  ;;  %v1384_v13 = vmul.u32 %v1382_v29, %v1358_v24  ;;  %v1362_v11 = vmul.u32 %v1360_v15, %v1358_v24 }
 0x162   : > { %v1271_v25 = vor.u32 4788187, %v1270_v43  ;;  %v1274_v61 = vcvt.s32.f32 %v1267_v0  ;;  %v1388_v23 = vshll.u32 %v1385_v46, 16  ;;  %v1365_v5 = vmul.u32 %v1361_v2, %v1359_v12 }
 0x163   : > { %v1366_v10 = vshll.u32 %v1363_v21, 16  ;;  %v1387_v32 = vmul.u32 %v1383_v9, %v1359_v12  ;;  %v1390_v49 = vshll.u32 %v1386_v22, 16  ;;  %v1368_v53 = vshll.u32 %v1364_v30, 16 }
 0x164   : > { %v1272_v52 = vand.u32 2147483647, %v1271_v25  ;;  %vm1392_vm0 = vc.u32 %v1384_v13, %v1388_v23  ;;  %v1394_v63 = vadd.s32 %v1388_v23, %v1384_v13  ;;  %v1389_v62 = vshrl.u32 %v1385_v46, 16 }
 0x165   : > { %vm1370_vm11 = vc.u32 %v1362_v11, %v1366_v10  ;;  %v1372_v51 = vadd.s32 %v1366_v10, %v1362_v11  ;;  %v1393_v59 = vsel %vm1392_vm0, 1, %v3069_v42  ;;  %v1345_v29 = vsel %vm1341_vm8, %v1325_v16, %v4173_v44 }
 0x166   : > { %v1275_v6 = vmul.f32 %v1274_v61, %v1272_v52  ;;  %v1371_v37 = vsel %vm1370_vm11, 1, %v3069_v42  ;;  %v1395_v28 = vadd.s32 %v1393_v59, %v1387_v32  ;;  %vm1396_vm13 = vc.u32 %v1394_v63, %v1390_v49 }
 0x167   : > { %v1373_v31 = vadd.s32 %v1371_v37, %v1365_v5  ;;  %vm1374_vm14 = vc.u32 %v1372_v51, %v1368_v53  ;;  %v1397_v0 = vsel %vm1396_vm13, 1, %v3069_v42  ;;  %v1347_v9 = vsel %vm1343_vm10, %v4175_v34, %v1346_v27 }
 0x168   : > { %v1276_v14 = vxor.u32 2147483648, %v1275_v6  ;;  %v1375_v20 = vsel %vm1374_vm14, 1, %v3069_v42  ;;  %v1399_v24 = vadd.s32 %v1397_v0, %v1395_v28  ;;  %v1367_v25 = vshrl.u32 %v1363_v21, 16 }
 0x169   : > { %v1377_v19 = vadd.s32 %v1375_v20, %v1373_v31  ;;  %v1391_v2 = vshrl.u32 %v1386_v22, 16  ;;  %v1279_v42 = vsel %vm1156_vm1, %v1278_v3, %v4146_v45  ;;  %v1369_v46 = vshrl.u32 %v1364_v30, 16 }
 0x16a   : > { %v1277_v39 = vsel %vm1156_vm1, %v1276_v14, %v1275_v6  ;;  %v1400_v52 = vadd.s32 %v1399_v24, %v1389_v62  ;;  %v1348_v44 = vsel %vm1342_vm3, %v1345_v29, %v1347_v9  ;;  %v1398_v34 = vadd.s32 %v1394_v63, %v1390_v49 }
 0x16b   : > { %v1280_v7 = vsel %vm4226_vm5, %v3868_v50, %v1277_v39  ;;  %v1378_v61 = vadd.s32 %v1377_v19, %v1367_v25  ;;  %v1281_v21 = vsel %vm4226_vm5, 0, %v1279_v42  ;;  %v1402_v5 = vmul.u32 %v4202_v40, %v1348_v44 }
 0x16c   : > { %v1282_v43 = vmul.f32 %v1280_v7, %v1280_v7  ;;  %v1401_v16 = vadd.s32 %v1400_v52, %v1391_v2  ;;  %v1298_v10 = vadd.s32 3, %v1281_v21  ;;  %v2386_v40 = vand.u32 3, %v4142_v38 }
 0x16d   : > { %v1379_v23 = vadd.s32 %v1378_v61, %v1369_v46  ;;  %v2540_v31 = vand.u32 3, %v1281_v21  ;;  %vm1311_vm13 = vcmp.lt.s32.totalorder %v4119_v18, 0  ;;  %vm1310_vm14 = vcmp.le.f32.partialorder %v1309_v56, 0.7853982 }
 0x16e   : > { %v1283_v12 = vmul.f32 -0.001358992, %v1282_v43  ;;  %v1290_v15 = vmul.f32 -0.00019511016, %v1282_v43  ;;  %v1405_v11 = vadd.s32 1, %v1401_v16  ;;  %v1299_v49 = vand.u32 3, %v1298_v10 }
 0x16f   : > { %vm1404_vm12 = vc.u32 %v1379_v23, %v1398_v34  ;;  %vm2388_vm9 = vcmp.eq.s32.totalorder %v2386_v40, 0  ;;  %vm2542_vm10 = vcmp.eq.s32.totalorder %v2540_v31, 0  ;;  %vm2391_vm3 = vcmp.eq.s32.totalorder %v2386_v40, 2 }
 0x170   : > { %v1284_v6 = vadd.f32 0.041655596, %v1283_v12  ;;  %v1291_v13 = vadd.f32 0.008332121, %v1290_v15  ;;  %v1406_v30 = vsel %vm1404_vm12, %v1405_v11, %v1401_v16  ;;  %vm1301_vm15 = vcmp.eq.s32.totalorder %v1299_v49, 0 }
 0x171   : > { %v1407_v32 = vadd.s32 %v1406_v30, %v1402_v5  ;;  %vm1304_vm2 = vcmp.eq.s32.totalorder %v1299_v49, 2  ;;  %vm1300_vm4 = vcmp.lt.s32.totalorder %v1299_v49, 2  ;;  %v2390_v38 = vsel %vm2388_vm9, %v4154_v8, %v1147_v54  ;;  %v2744_v5 = vld.sshfl [vmem:[#allocation1] sm:$0xff pattern:$0x75316420] }
 0x172   : > { %v1285_v27 = vmul.f32 %v1284_v6, %v1282_v43  ;;  %v1292_v22 = vmul.f32 %v1291_v13, %v1282_v43  ;;  %vm2387_vm1 = vcmp.lt.s32.totalorder %v2386_v40, 2  ;;  %v2393_v19 = vsel %vm2391_vm3, %v1150_v57, %v4160_v33  ;;  %2752 = vst [vmem:[%s3572_s23 + $0x60] sm:$0x7] %v2744_v5 }
 0x173   : > { %v1408_v53 = vadd.s32 536870912, %v1407_v32  ;;  %vm2545_vm5 = vcmp.eq.s32.totalorder %v2540_v31, 2  ;;  %v2394_v12 = vsel %vm2387_vm1, %v2390_v38, %v2393_v19  ;;  %vm2541_vm0 = vcmp.lt.s32.totalorder %v2540_v31, 2 }
 0x174   : > { %v1286_v45 = vadd.f32 -0.4999988, %v1285_v27  ;;  %v1293_v3 = vadd.f32 -0.16666654, %v1292_v22  ;;  %v2395_v54 = vsel %vm1142_vm6, nan, %v2394_v12  ;;  %v1403_v61 = vadd.s32 %v1398_v34, %v1379_v23 }
 0x175   : > { %v4258_v63 = vshrl.u32 %v1408_v53, 30  ;;  %v2717_v8 = vrot.slane %v4099_v60, 4  ;;  %v2719_v33 = vrot.slane %v2395_v54, 4  ;;  %vm2712_vm6 = vcmask 1043456  }
 0x176   : > { %v1287_v14 = vmul.f32 %v1286_v45, %v1282_v43  ;;  %v1294_v41 = vmul.f32 %v1293_v3, %v1282_v43  ;;  %v2745_v45 = vld.sshfl [vmem:[#allocation1 + $0x8] sm:$0xff pattern:$0x75316420]  ;;  %vm1452_vm9 = vweird.f32 %v4119_v18 }
 0x177   : > { %v1410_v37 = vshll.u32 %v4258_v63, 30  ;;  %v2718_v23 = vsel %vm2712_vm6, %v2713_v48, %v2717_v8  ;;  %v2720_v60 = vsel %vm2712_vm6, %v2714_v4, %v2719_v33  ;;  %v2746_v48 = vld.sshfl [vmem:[#allocation1 + $0x10] sm:$0xff pattern:$0x75316420]  ;;  %2753 = vst [vmem:[%s3572_s23 + $0x68] sm:$0x7] %v2745_v45 }
 0x178   : > { %v1288_v51 = vadd.f32 1.0, %v1287_v14  ;;  %v1295_v59 = vadd.f32 1.0, %v1294_v41  ;;  %2737 = vst [vmem:[%s3572_s23 + $0x40] sm:$0xff] %v2718_v23  ;;  %v1433_v4 = vsub.s32 4, %v4258_v63 }
 0x179   : > { %v1411_v0 = vsub.s32 %v1407_v32, %v1410_v37  ;;  %2738 = vst [vmem:[%s3572_s23 + $0x48] sm:$0xff] %v2720_v60 }
 0x17a   : > { %v1296_v1 = vmul.f32 %v1295_v59, %v1280_v7  ;;  %v1305_v39 = vxor.u32 2147483648, %v1288_v51  ;;  %2754 = vst [vmem:[%s3572_s23 + $0x70] sm:$0x7] %v2746_v48  ;;  %v1434_v14 = vsel %vm1311_vm13, %v1433_v4, %v4258_v63 }
 0x17b   : > { %vm1412_vm8 = vcmp.lt.s32.totalorder %v1411_v0, 0  ;;  %v1413_v24 = vsub.s32 0, %v1411_v0 }
 0x17c   : > { %v1302_v28 = vxor.u32 2147483648, %v1296_v1  ;;  %v1306_v20 = vsel %vm1304_vm2, %v1305_v39, %v1296_v1  ;;  %v2547_v15 = vsel %vm2545_vm5, %v1305_v39, %v1296_v1 }
 0x17d   : > { %v1414_v29 = vsel %vm1412_vm8, %v1413_v24, %v1411_v0 }
 0x17e   : > { %v1303_v43 = vsel %vm1301_vm15, %v1288_v51, %v1302_v28  ;;  %v2544_v9 = vsel %vm2542_vm10, %v1288_v51, %v1302_v28  ;;  %v1415_v25 = vclz %v1414_v29  ;;  %v1436_v51 = vsel %vm1310_vm14, 0, %v1434_v14 }
 0x17f   : > { %v1307_v62 = vsel %vm1300_vm4, %v1303_v43, %v1306_v20  ;;  %v2548_v52 = vsel %vm2541_vm0, %v2544_v9, %v2547_v15  ;;  %v1453_v37 = vadd.s32 3, %v1436_v51 }
 0x180   : > { %v1308_v7 = vsel %vm1297_vm7, nan, %v1307_v62  ;;  %v2876_v2 = vadd.s32 4294967294, %v1415_v25  ;;  %v2549_v46 = vsel %vm1297_vm7, nan, %v2548_v52 }
 0x181   : > { %1470 = vst [vmem:[%s3572_s23 + $0x30] sm:$0xf] %v1308_v7  ;;  %v2721_v21 = vrot.slane %v2549_v46, 4  ;;  %v1454_v43 = vand.u32 3, %v1453_v37 }
 0x182   : > { %vm2877_vm11 = vcmp.lt.s32.totalorder %v2876_v2, 0 }
 0x183   : > { %v1418_v42 = vsel %vm2877_vm11, 0, %v2876_v2  ;;  %v2722_v34 = vsel %vm2712_vm6, %v2715_v58, %v2721_v21  ;;  %vm1455_vm2 = vcmp.lt.s32.totalorder %v1454_v43, 2  ;;  %vm1456_vm4 = vcmp.eq.s32.totalorder %v1454_v43, 0 }
 0x184   : > { %v1419_v6 = vsub.s32 32, %v1418_v42  ;;  %v1423_v13 = vsub.s32 4294967266, %v1418_v42  ;;  %v1420_v57 = vshll.u32 %v1411_v0, %v1418_v42  ;;  %2739 = vst [vmem:[%s3572_s23 + $0x50] sm:$0xff] %v2722_v34  ;;  %v2694_v0 = vand.u32 3, %v1436_v51 }
 0x185   : > { %vm1459_vm7 = vcmp.eq.s32.totalorder %v1454_v43, 2 }
 0x186   : > { %v1421_v44 = vshrl.u32 %v1403_v61, %v1419_v6  ;;  %v1424_v16 = vadd.s32 127, %v1423_v13  ;;  %vm2695_vm12 = vcmp.lt.s32.totalorder %v2694_v0, 2  ;;  %vm2696_vm15 = vcmp.eq.s32.totalorder %v2694_v0, 0 }
 0x187   : > { %vm2699_vm8 = vcmp.eq.s32.totalorder %v2694_v0, 2 }
 0x188   : > { %v1422_v35 = vor.u32 %v1421_v44, %v1420_v57  ;;  %v1425_v27 = vshll.u32 %v1424_v16, 23 }
 0x18a   : > { %v1426_v50 = vor.u32 4788187, %v1425_v27  ;;  %v1429_v11 = vcvt.s32.f32 %v1422_v35 }
 0x18c   : > { %v1427_v22 = vand.u32 2147483647, %v1426_v50 }
 0x18e   : > { %v1430_v47 = vmul.f32 %v1429_v11, %v1427_v22 }
 0x190   : > { %v1431_v3 = vxor.u32 2147483648, %v1430_v47 }
 0x192   : > { %v1432_v17 = vsel %vm1311_vm13, %v1431_v3, %v1430_v47 }
 0x193   : > { %v1435_v58 = vsel %vm1310_vm14, %v4119_v18, %v1432_v17 }
 0x194   : > { %v1437_v30 = vmul.f32 %v1435_v58, %v1435_v58 }
 0x196   : > { %v1438_v10 = vmul.f32 -0.001358992, %v1437_v30  ;;  %v1445_v32 = vmul.f32 -0.00019511016, %v1437_v30 }
 0x198   : > { %v1439_v41 = vadd.f32 0.041655596, %v1438_v10  ;;  %v1446_v53 = vadd.f32 0.008332121, %v1445_v32 }
 0x19a   : > { %v1440_v59 = vmul.f32 %v1439_v41, %v1437_v30  ;;  %v1447_v49 = vmul.f32 %v1446_v53, %v1437_v30 }
 0x19c   : > { %v1441_v1 = vadd.f32 -0.4999988, %v1440_v59  ;;  %v1448_v39 = vadd.f32 -0.16666654, %v1447_v49 }
 0x19e   : > { %v1442_v56 = vmul.f32 %v1441_v1, %v1437_v30  ;;  %v1449_v40 = vmul.f32 %v1448_v39, %v1437_v30 }
 0x1a0   : > { %v1443_v28 = vadd.f32 1.0, %v1442_v56  ;;  %v1450_v31 = vadd.f32 1.0, %v1449_v40 }
 0x1a2   : > { %v1451_v20 = vmul.f32 %v1450_v31, %v1435_v58  ;;  %v1460_v62 = vxor.u32 2147483648, %v1443_v28 }
 0x1a4   : > { %v1457_v63 = vxor.u32 2147483648, %v1451_v20  ;;  %v1461_v7 = vsel %vm1459_vm7, %v1460_v62, %v1451_v20  ;;  %v2701_v29 = vsel %vm2699_vm8, %v1460_v62, %v1451_v20 }
 0x1a6   : > { %v1458_v24 = vsel %vm1456_vm4, %v1443_v28, %v1457_v63  ;;  %v2698_v38 = vsel %vm2696_vm15, %v1443_v28, %v1457_v63 }
 0x1a7   : > { %v1462_v9 = vsel %vm1455_vm2, %v1458_v24, %v1461_v7  ;;  %v2702_v25 = vsel %vm2695_vm12, %v2698_v38, %v2701_v29 }
 0x1a8   : > { %v1463_v19 = vsel %vm1452_vm9, nan, %v1462_v9  ;;  %v2703_v12 = vsel %vm1452_vm9, nan, %v2702_v25 }
 0x1a9   : > { %1471 = vst [vmem:[%s3572_s23 + $0x38] sm:$0xf] %v1463_v19  ;;  %v2723_v15 = vrot.slane %v2703_v12, 4 }
 0x1ab   : > { %v2724_v2 = vsel %vm2712_vm6, %v2716_v55, %v2723_v15 }
 0x1ac   : > { %2740 = vst [vmem:[%s3572_s23 + $0x58] sm:$0xff] %v2724_v2 }
 0x1ad   : > { %3022 = shalt.err (!%p3019_p4)
}
 0x1ae   : > { %s3070_s14 = smov 512   ;;  %s3071_s16 = smov 1024  }
 0x1af   : > { %s3072_s20 = smov 32  }
 0x1b0   : > { %2911 = dma.vmem_to_hbm [thread:$0]  (%p3133_p11), %s2770_s28, 2048, %s2772_s10, %s2757_s29, %s3070_s14, %s3071_s16, %s3072_s20  }
 0x1b1 PF: > { %s2786_s21 = sand.u32 1, %s3049_s6   ;;  %p4358_p7 = scmp.ge.s32.totalorder %s3061_s9, 2 }
 0x1b2   : > { %s2787_s22 = scalar_lea.sflag [#allocation4], %s2786_s21 }
 0x1b3   : > { %p2918_p5 = pnand %p4358_p7, %p3137_p12 }
 0x1b5   : > { %p2919_p8 = pneg %p2918_p5 }
 0x1b7   : > { %3044 = dma.done.wait (%p2919_p8), %s2787_s22, 2048  }
 0x1b8   : > { %3046 = vsyncadd (%p2919_p8), %s2787_s22, 4294965248  ;;  %p14_p10 = scmp.ge.s32.totalorder %s3108_s12, 4   ;;  %s4359_s6 = smov %s3053_s7 }
 0x1b9   : > { %s4360_s7 = smov %s3057_s8  ;;  %s4361_s8 = smov %s3120_s15 }
 0x1ba   : > { %s4362_s9 = smov %s3108_s12  ;;  %16 = sbr.rel (!%p14_p10) target bundleno = 5 (0x5), region = 74 }
 0x1bf   :  { %2793 = vsyncpa [#allocation3], 1 }
 0x1c0   :  { %2795 = vsyncpa [#allocation3 + $0x1], 1 }
 0x1c1   :  { %2796 = vsyncpa [#allocation4], 1 }
 0x1c2   :  { %2798 = vsyncpa [#allocation4 + $0x1], 1 }

</bundles_post_ra>
